<compile_context>
chip_gen: v7x
topology: tpu7x:2x2x1
jax: 0.10.0
libtpu: 0.0.40
codegen_flags: <defaults>
</compile_context>

<pallas_src>
import functools

import jax
import jax.numpy as jnp
from jax.experimental import pallas as pl
from jax.experimental.pallas import tpu as pltpu


# (kh, kw, stride, cin_real, cout_real) for the three conv layers -- STATIC.
_LAYER_CFGS = (
    (8, 8, 4, 4, 32),
    (4, 4, 2, 32, 64),
    (3, 3, 1, 64, 64),
)
_NPAD = 128                 # lane-dense padded output channel count
_OBS_SCALE = 1.0 / 255.0    # applied in the f32 epilogue of layer 0
_TARGET_TILE_ROWS = 2048    # per-grid-step im2col rows (VMEM sizing target)


def _round_up(x, m):
    return (x + m - 1) // m * m


# ----------------------------- Pallas kernel ------------------------------ #
def _matmul_bias_relu_kernel(x_ref, w_ref, b_ref, o_ref, *, scale):
    """o = relu(scale * (x @ w) + b); bf16 operands, f32 accumulate on the MXU."""
    acc = jnp.dot(x_ref[...], w_ref[...], preferred_element_type=jnp.float32)
    if scale != 1.0:                       # static Python branch (layer 0 only)
        acc = acc * scale
    o_ref[...] = jnp.maximum(acc + b_ref[...], 0.0).astype(o_ref.dtype)


def _choose_tile_m(M, rows_per_sample):
    """Per-layer M tile: ~whole samples, multiple of 8 (keeps in-kernel matmul
    shapes fully aligned), <= ~2048 rows, and >= 2 grid steps when B >= 2 so
    both v7x TensorCores are fed even at small batch."""
    if M <= 8:
        return M
    n_samples = max(1, M // rows_per_sample)
    spt = max(1, min(_TARGET_TILE_ROWS // max(1, rows_per_sample),
                     pl.cdiv(n_samples, 2)))
    tile = min(M, spt * rows_per_sample)
    tile = min(M, _round_up(tile, 8))      # sublane alignment (trailing block masked)
    return tile


def _matmul_bias_relu(patches, w_mat, bias, *, rows_per_sample, scale):
    """patches: (M, K) bf16, w_mat: (K, 128) bf16, bias: (1, 128) f32 -> (M, 128) bf16."""
    M, K = patches.shape
    Kw, N = w_mat.shape
    assert K == Kw and N == _NPAD and K % 128 == 0

    tile_m = _choose_tile_m(M, rows_per_sample)
    grid_m = pl.cdiv(M, tile_m)
    kernel = functools.partial(_matmul_bias_relu_kernel, scale=scale)

    return pl.pallas_call(
        kernel,
        out_shape=jax.ShapeDtypeStruct((M, N), jnp.bfloat16),
        grid=(grid_m,),
        in_specs=[
            pl.BlockSpec((tile_m, K), lambda i: (i, 0)),   # streamed M tiles
            pl.BlockSpec((K, N), lambda i: (0, 0)),        # weight resident
            pl.BlockSpec((1, N), lambda i: (0, 0)),        # bias resident
        ],
        out_specs=pl.BlockSpec((tile_m, N), lambda i: (i, 0)),
        compiler_params=pltpu.CompilerParams(
            dimension_semantics=("parallel",),             # megacore M-tile sharding
            vmem_limit_bytes=32 * 1024 * 1024,             # fits v5e/v6e/v7x budgets
        ),
    )(patches, w_mat, bias)


# ------------------------------- JAX glue --------------------------------- #
def _im2col_nhwc(x, kh, kw, stride, k_pad):
    """x: (B, H, W, C) -> (B*OH*OW, k_pad), K ordered (kh, kw, cin) + zero tail pad."""
    B, H, W, C = x.shape
    OH = (H - kh) // stride + 1
    OW = (W - kw) // stride + 1
    cols = []
    for i in range(kh):                    # static Python ints -> static strided slices
        for j in range(kw):
            cols.append(x[:, i:i + (OH - 1) * stride + 1:stride,
                          j:j + (OW - 1) * stride + 1:stride, :])
    K = kh * kw * C
    if k_pad > K:                          # lane-align K (layer 2: 576 -> 640)
        cols.append(jnp.zeros((B, OH, OW, k_pad - K), x.dtype))
    patches = jnp.concatenate(cols, axis=-1)
    return patches.reshape(B * OH * OW, k_pad), OH, OW


def _orthogonal_conv_weight(key, cout, cin, kh, kw, std):
    """Deterministic orthogonal init mirroring layer_init (std=sqrt(2))."""
    fan_in = cin * kh * kw
    a = jax.random.normal(key, (fan_in, cout), dtype=jnp.float32)
    q, _ = jnp.linalg.qr(a)                # orthonormal columns
    return (std * q.T).reshape(cout, cin, kh, kw)   # OIHW (torch layout)


def init_policy_net_params(key):
    """Raw torch-layout params: list of (w_oihw f32, bias f32)."""
    std = jnp.sqrt(2.0)
    params = []
    for idx, (kh, kw, stride, cin, cout) in enumerate(_LAYER_CFGS):
        wkey = jax.random.fold_in(key, idx)
        w_oihw = _orthogonal_conv_weight(wkey, cout, cin, kh, kw, std)
        params.append((w_oihw, jnp.zeros((cout,), jnp.float32)))
    return params


def prepare_pallas_params(raw_params):
    """Pre-pack weights for the Pallas path.

    Each layer's weight becomes a (K_pad, 128) bf16 matrix with
    K_pad = round_up(kh*kw*cin_real, 128) (zero rows for the K pad) and the
    real cout columns zero-padded to 128 lanes.  The /255 scale is NOT folded
    here; it is applied in the kernel's f32 epilogue.
    """
    pparams = []
    for (w_oihw, b), (kh, kw, stride, cin, cout) in zip(raw_params, _LAYER_CFGS):
        K = kh * kw * cin
        K_pad = _round_up(K, 128)
        w_hwio = jnp.transpose(w_oihw, (2, 3, 1, 0)).reshape(K, cout)   # (kh,kw,cin)->K
        w_mat = jnp.zeros((K_pad, _NPAD), jnp.float32).at[:K, :cout].set(w_hwio)
        b_pad = jnp.zeros((1, _NPAD), jnp.float32).at[0, :cout].set(b)
        pparams.append((w_mat.astype(jnp.bfloat16), b_pad))
    return pparams


def policy_net_forward(obs_nchw, pparams):
    """Pallas forward.  obs_nchw: (B, 4, 84, 84) f32 raw pixels in [0, 255].

    Returns (features, state) with features: (B, 3136), matching torch's
    Flatten over the NCHW (B, 64, 7, 7) conv output.
    """
    x = jnp.transpose(obs_nchw, (0, 2, 3, 1)).astype(jnp.bfloat16)   # NHWC bf16
    B = x.shape[0]
    for idx, ((w_mat, b_pad), (kh, kw, stride, cin, cout)) in enumerate(
            zip(pparams, _LAYER_CFGS)):
        patches, OH, OW = _im2col_nhwc(x, kh, kw, stride, w_mat.shape[0])
        scale = _OBS_SCALE if idx == 0 else 1.0
        out = _matmul_bias_relu(patches, w_mat, b_pad,
                                rows_per_sample=OH * OW, scale=scale)
        # De-pad channels before the next im2col: only the REAL cout channels
        # feed the next contraction (K stays kh*kw*cin_real, not kh*kw*128).
        x = out.reshape(B, OH, OW, _NPAD)[..., :cout]
    feats = jnp.transpose(x, (0, 3, 1, 2)).astype(jnp.float32)       # NCHW flatten order
    return feats.reshape(B, -1), None


# ------------------------- pure-JAX f32 reference -------------------------- #
def policy_net_reference(obs_nchw, raw_params):
    x = obs_nchw.astype(jnp.float32) / 255.0
    for (w_oihw, b), (kh, kw, stride, cin, cout) in zip(raw_params, _LAYER_CFGS):
        x = jax.lax.conv_general_dilated(
            x, w_oihw, window_strides=(stride, stride), padding="VALID",
            dimension_numbers=("NCHW", "OIHW", "NCHW"))
        x = jax.nn.relu(x + b[None, :, None, None])
    return x.reshape(x.shape[0], -1)


if __name__ == "__main__":
    key = jax.random.PRNGKey(0)
    pkey, okey = jax.random.split(key)

    raw_params = init_policy_net_params(pkey)
    pparams = prepare_pallas_params(raw_params)

    # Atari-style observation: batch=2, 4 stacked 84x84 frames in [0, 255].
    obs = jax.random.uniform(okey, (2, 4, 84, 84), jnp.float32,
                             minval=0.0, maxval=255.0)

    feats, state = jax.jit(policy_net_forward)(obs, pparams)
    feats = jax.block_until_ready(feats)
    assert feats.shape == (2, 64 * 7 * 7), feats.shape

    ref = jax.block_until_ready(policy_net_reference(obs, raw_params))
    max_err = float(jnp.max(jnp.abs(feats - ref)))
    # bf16 operands vs. all-f32 reference: tolerance sized for bf16 rounding
    # accumulated over three conv layers (errors here are ~1e-2; gross bugs are O(1)).
    assert jnp.allclose(feats, ref, atol=1e-1, rtol=5e-2), max_err

    print("KERNEL_OK")
</pallas_src>

<mosaic_0001>
module attributes {stable_mosaic.version = 11 : i64} {
  func.func @_matmul_bias_relu_kernel(%arg0: i32, %arg1: memref<400x256xbf16, #tpu.memory_space<vmem>>, %arg2: memref<256x128xbf16, #tpu.memory_space<vmem>>, %arg3: memref<1x128xf32, #tpu.memory_space<vmem>>, %arg4: memref<400x128xbf16, #tpu.memory_space<vmem>>) attributes {dimension_semantics = [#tpu.dimension_semantics<parallel>], iteration_bounds = array<i64: 2>, scalar_prefetch = 0 : i64, scratch_operands = 0 : i64, tpu.core_type = #tpu.core_type<tc>, window_params = [{transform_indices = @transform_0, window_bounds = array<i64: 400, 256>}, {pipeline_mode = #tpu.pipeline_mode<synchronous>, transform_indices = @transform_1, window_bounds = array<i64: 256, 128>}, {pipeline_mode = #tpu.pipeline_mode<synchronous>, transform_indices = @transform_2, window_bounds = array<i64: 1, 128>}, {transform_indices = @transform_3, window_bounds = array<i64: 400, 128>}]} {
    %c0 = arith.constant 0 : index
    %c0_0 = arith.constant 0 : index
    %0 = vector.load %arg1[%c0, %c0_0] : memref<400x256xbf16, #tpu.memory_space<vmem>>, vector<400x256xbf16>
    %c0_1 = arith.constant 0 : index
    %c0_2 = arith.constant 0 : index
    %1 = vector.load %arg2[%c0_1, %c0_2] : memref<256x128xbf16, #tpu.memory_space<vmem>>, vector<256x128xbf16>
    %cst = arith.constant dense<0.000000e+00> : vector<400x128xf32>
    %2 = tpu.matmul %0, %1, %cst {dimension_numbers = #tpu.dot_dimension_numbers<[1], [0], [0], [1], [0, 0, 1, 1], [], []>} : vector<400x256xbf16>, vector<256x128xbf16>, vector<400x128xf32> -> vector<400x128xf32>
    %cst_3 = arith.constant 0.00392156886 : f32
    %3 = vector.broadcast %cst_3 : f32 to vector<400x128xf32>
    %4 = arith.mulf %2, %3 : vector<400x128xf32>
    %c0_4 = arith.constant 0 : index
    %c0_5 = arith.constant 0 : index
    %5 = vector.load %arg3[%c0_4, %c0_5] : memref<1x128xf32, #tpu.memory_space<vmem>>, vector<1x128xf32>
    %6 = vector.broadcast %5 : vector<1x128xf32> to vector<400x128xf32>
    %7 = arith.addf %4, %6 : vector<400x128xf32>
    %cst_6 = arith.constant 0.000000e+00 : f32
    %8 = vector.broadcast %cst_6 : f32 to vector<400x128xf32>
    %9 = arith.maximumf %7, %8 : vector<400x128xf32>
    %10 = arith.truncf %9 : vector<400x128xf32> to vector<400x128xbf16>
    %c0_7 = arith.constant 0 : index
    %c0_8 = arith.constant 0 : index
    %11 = vector.load %arg4[%c0_7, %c0_8] : memref<400x128xbf16, #tpu.memory_space<vmem>>, vector<400x128xbf16>
    tpu.vector_store %arg4[%c0_7, %c0_8], %10 {strides = array<i32>} : memref<400x128xbf16, #tpu.memory_space<vmem>>, vector<400x128xbf16>,
    return
  }
  func.func @transform_0(%arg0: i32) -> (i32, i32) {
    %c0_i32 = arith.constant 0 : i32
    %c0_i32_0 = arith.constant 0 : i32
    return %arg0, %c0_i32 : i32, i32
  }
  func.func @transform_1(%arg0: i32) -> (i32, i32) {
    %c0_i32 = arith.constant 0 : i32
    %c0_i32_0 = arith.constant 0 : i32
    %c0_i32_1 = arith.constant 0 : i32
    return %c0_i32, %c0_i32_0 : i32, i32
  }
  func.func @transform_2(%arg0: i32) -> (i32, i32) {
    %c0_i32 = arith.constant 0 : i32
    %c0_i32_0 = arith.constant 0 : i32
    %c0_i32_1 = arith.constant 0 : i32
    return %c0_i32, %c0_i32_0 : i32, i32
  }
  func.func @transform_3(%arg0: i32) -> (i32, i32) {
    %c0_i32 = arith.constant 0 : i32
    %c0_i32_0 = arith.constant 0 : i32
    return %arg0, %c0_i32 : i32, i32
  }
}

module attributes {stable_mosaic.version = 11 : i64} {
  func.func @_matmul_bias_relu_kernel(%arg0: i32, %arg1: memref<88x512xbf16, #tpu.memory_space<vmem>>, %arg2: memref<512x128xbf16, #tpu.memory_space<vmem>>, %arg3: memref<1x128xf32, #tpu.memory_space<vmem>>, %arg4: memref<88x128xbf16, #tpu.memory_space<vmem>>) attributes {dimension_semantics = [#tpu.dimension_semantics<parallel>], iteration_bounds = array<i64: 2>, scalar_prefetch = 0 : i64, scratch_operands = 0 : i64, tpu.core_type = #tpu.core_type<tc>, window_params = [{transform_indices = @transform_0, window_bounds = array<i64: 88, 512>}, {pipeline_mode = #tpu.pipeline_mode<synchronous>, transform_indices = @transform_1, window_bounds = array<i64: 512, 128>}, {pipeline_mode = #tpu.pipeline_mode<synchronous>, transform_indices = @transform_2, window_bounds = array<i64: 1, 128>}, {transform_indices = @transform_3, window_bounds = array<i64: 88, 128>}]} {
    %c0 = arith.constant 0 : index
    %c0_0 = arith.constant 0 : index
    %0 = vector.load %arg1[%c0, %c0_0] : memref<88x512xbf16, #tpu.memory_space<vmem>>, vector<88x512xbf16>
    %c0_1 = arith.constant 0 : index
    %c0_2 = arith.constant 0 : index
    %1 = vector.load %arg2[%c0_1, %c0_2] : memref<512x128xbf16, #tpu.memory_space<vmem>>, vector<512x128xbf16>
    %cst = arith.constant dense<0.000000e+00> : vector<88x128xf32>
    %2 = tpu.matmul %0, %1, %cst {dimension_numbers = #tpu.dot_dimension_numbers<[1], [0], [0], [1], [0, 0, 1, 1], [], []>} : vector<88x512xbf16>, vector<512x128xbf16>, vector<88x128xf32> -> vector<88x128xf32>
    %c0_3 = arith.constant 0 : index
    %c0_4 = arith.constant 0 : index
    %3 = vector.load %arg3[%c0_3, %c0_4] : memref<1x128xf32, #tpu.memory_space<vmem>>, vector<1x128xf32>
    %4 = vector.broadcast %3 : vector<1x128xf32> to vector<88x128xf32>
    %5 = arith.addf %2, %4 : vector<88x128xf32>
    %cst_5 = arith.constant 0.000000e+00 : f32
    %6 = vector.broadcast %cst_5 : f32 to vector<88x128xf32>
    %7 = arith.maximumf %5, %6 : vector<88x128xf32>
    %8 = arith.truncf %7 : vector<88x128xf32> to vector<88x128xbf16>
    %c0_6 = arith.constant 0 : index
    %c0_7 = arith.constant 0 : index
    %9 = vector.load %arg4[%c0_6, %c0_7] : memref<88x128xbf16, #tpu.memory_space<vmem>>, vector<88x128xbf16>
    tpu.vector_store %arg4[%c0_6, %c0_7], %8 {strides = array<i32>} : memref<88x128xbf16, #tpu.memory_space<vmem>>, vector<88x128xbf16>,
    return
  }
  func.func @transform_0(%arg0: i32) -> (i32, i32) {
    %c0_i32 = arith.constant 0 : i32
    %c0_i32_0 = arith.constant 0 : i32
    return %arg0, %c0_i32 : i32, i32
  }
  func.func @transform_1(%arg0: i32) -> (i32, i32) {
    %c0_i32 = arith.constant 0 : i32
    %c0_i32_0 = arith.constant 0 : i32
    %c0_i32_1 = arith.constant 0 : i32
    return %c0_i32, %c0_i32_0 : i32, i32
  }
  func.func @transform_2(%arg0: i32) -> (i32, i32) {
    %c0_i32 = arith.constant 0 : i32
    %c0_i32_0 = arith.constant 0 : i32
    %c0_i32_1 = arith.constant 0 : i32
    return %c0_i32, %c0_i32_0 : i32, i32
  }
  func.func @transform_3(%arg0: i32) -> (i32, i32) {
    %c0_i32 = arith.constant 0 : i32
    %c0_i32_0 = arith.constant 0 : i32
    return %arg0, %c0_i32 : i32, i32
  }
}

module attributes {stable_mosaic.version = 11 : i64} {
  func.func @_matmul_bias_relu_kernel(%arg0: i32, %arg1: memref<56x640xbf16, #tpu.memory_space<vmem>>, %arg2: memref<640x128xbf16, #tpu.memory_space<vmem>>, %arg3: memref<1x128xf32, #tpu.memory_space<vmem>>, %arg4: memref<56x128xbf16, #tpu.memory_space<vmem>>) attributes {dimension_semantics = [#tpu.dimension_semantics<parallel>], iteration_bounds = array<i64: 2>, scalar_prefetch = 0 : i64, scratch_operands = 0 : i64, tpu.core_type = #tpu.core_type<tc>, window_params = [{transform_indices = @transform_0, window_bounds = array<i64: 56, 640>}, {pipeline_mode = #tpu.pipeline_mode<synchronous>, transform_indices = @transform_1, window_bounds = array<i64: 640, 128>}, {pipeline_mode = #tpu.pipeline_mode<synchronous>, transform_indices = @transform_2, window_bounds = array<i64: 1, 128>}, {transform_indices = @transform_3, window_bounds = array<i64: 56, 128>}]} {
    %c0 = arith.constant 0 : index
    %c0_0 = arith.constant 0 : index
    %0 = vector.load %arg1[%c0, %c0_0] : memref<56x640xbf16, #tpu.memory_space<vmem>>, vector<56x640xbf16>
    %c0_1 = arith.constant 0 : index
    %c0_2 = arith.constant 0 : index
    %1 = vector.load %arg2[%c0_1, %c0_2] : memref<640x128xbf16, #tpu.memory_space<vmem>>, vector<640x128xbf16>
    %cst = arith.constant dense<0.000000e+00> : vector<56x128xf32>
    %2 = tpu.matmul %0, %1, %cst {dimension_numbers = #tpu.dot_dimension_numbers<[1], [0], [0], [1], [0, 0, 1, 1], [], []>} : vector<56x640xbf16>, vector<640x128xbf16>, vector<56x128xf32> -> vector<56x128xf32>
    %c0_3 = arith.constant 0 : index
    %c0_4 = arith.constant 0 : index
    %3 = vector.load %arg3[%c0_3, %c0_4] : memref<1x128xf32, #tpu.memory_space<vmem>>, vector<1x128xf32>
    %4 = vector.broadcast %3 : vector<1x128xf32> to vector<56x128xf32>
    %5 = arith.addf %2, %4 : vector<56x128xf32>
    %cst_5 = arith.constant 0.000000e+00 : f32
    %6 = vector.broadcast %cst_5 : f32 to vector<56x128xf32>
    %7 = arith.maximumf %5, %6 : vector<56x128xf32>
    %8 = arith.truncf %7 : vector<56x128xf32> to vector<56x128xbf16>
    %c0_6 = arith.constant 0 : index
    %c0_7 = arith.constant 0 : index
    %9 = vector.load %arg4[%c0_6, %c0_7] : memref<56x128xbf16, #tpu.memory_space<vmem>>, vector<56x128xbf16>
    tpu.vector_store %arg4[%c0_6, %c0_7], %8 {strides = array<i32>} : memref<56x128xbf16, #tpu.memory_space<vmem>>, vector<56x128xbf16>,
    return
  }
  func.func @transform_0(%arg0: i32) -> (i32, i32) {
    %c0_i32 = arith.constant 0 : i32
    %c0_i32_0 = arith.constant 0 : i32
    return %arg0, %c0_i32 : i32, i32
  }
  func.func @transform_1(%arg0: i32) -> (i32, i32) {
    %c0_i32 = arith.constant 0 : i32
    %c0_i32_0 = arith.constant 0 : i32
    %c0_i32_1 = arith.constant 0 : i32
    return %c0_i32, %c0_i32_0 : i32, i32
  }
  func.func @transform_2(%arg0: i32) -> (i32, i32) {
    %c0_i32 = arith.constant 0 : i32
    %c0_i32_0 = arith.constant 0 : i32
    %c0_i32_1 = arith.constant 0 : i32
    return %c0_i32, %c0_i32_0 : i32, i32
  }
  func.func @transform_3(%arg0: i32) -> (i32, i32) {
    %c0_i32 = arith.constant 0 : i32
    %c0_i32_0 = arith.constant 0 : i32
    return %arg0, %c0_i32 : i32, i32
  }
}

</mosaic_0001>

<bundles_post_ra>
// kernel: policy_net_forward.3
= control target key start
LH: loop header
LB: loop body
LE: loop exit
PB: predicated region body
PF: predicated region fallthrough
CT: control target
= control target key end

     0   :  { %s1790_s12 = smov 0   ;;  %s2025_s0 = inlined_call_operand.vmem [shape: bf16[800,256], index: 0, kind: input, shape index: {}]   ;;  %s2026_s1 = inlined_call_operand.vmem [shape: bf16[256,128], index: 1, kind: input, shape index: {}]   ;;  %s2027_s2 = inlined_call_operand.vmem [shape: f32[1,128], index: 2, kind: input, shape index: {}]   ;;  %s2028_s3 = inlined_call_operand.vmem [shape: bf16[800,128], index: 3, kind: output, shape index: {}]  }
   0x1 LB: > { %s1302_s13 = sadd.s32 4294967295, %s1767_s12   ;;  %p1306_p0 = scmp.ge.s32.totalorder %s1767_s12, 1  ;;  %s1767_s12 = sphi %s1790_s12, %s13_s12  }
   0x2   : > { %p139_p1 = scmp.lt.s32.totalorder %s1767_s12, 3 }
   0x4   : > { %p140_p2 = pnand %p1306_p0, %p139_p1 }
   0x5   : > { %v1670_v0 = vld [vmem:[%s2026_s1] sm:$0xff] (!%p140_p2)   ;;  %v1769_v1 = vmov (!%p140_p2), 0   ;;  %s164_s16 = smul.u32 (!%p140_p2), 50, %s1302_s13  ;;  %v1671_v2 = vld [vmem:[%s2026_s1 + $0x8] sm:$0xff] (!%p140_p2)   ;;  %v1672_v3 = vld [vmem:[%s2026_s1 + $0x10] sm:$0xff] (!%p140_p2)  }
   0x6   : > { %143 = sbr.rel (%p140_p2) target bundleno = 389 (0x185), region = 32  ;;  %606 = vmatprep.subr.bf16.mxu0 (!%p140_p2), %v1769_v1  ;;  %1629 = vmatprep.subr.bf16.mxu1 (!%p140_p2), %v1769_v1  ;;  %v1673_v4 = vld [vmem:[%s2026_s1 + $0x18] sm:$0xff] (!%p140_p2)   ;;  %v1674_v5 = vld [vmem:[%s2026_s1 + $0x20] sm:$0xff] (!%p140_p2)   ;;  %v1675_v7 = vld [vmem:[%s2026_s1 + $0x28] sm:$0xff] (!%p140_p2)  }
   0x7   : > { %607 = vmatpush1.bf16.msra.mxu0 (!%p140_p2), %v1670_v0  ;;  %1645 = vmatpush1.bf16.msra.mxu1 (!%p140_p2), %v1670_v0  ;;  %p165_p3 = scmp.lt.s32.totalorder (!%p140_p2), %s164_s16, 99  ;;  %v1676_v9 = vld [vmem:[%s2026_s1 + $0x30] sm:$0xff] (!%p140_p2)   ;;  %v1677_v10 = vld [vmem:[%s2026_s1 + $0x38] sm:$0xff] (!%p140_p2)   ;;  %v1678_v11 = vld [vmem:[%s2026_s1 + $0x40] sm:$0xff] (!%p140_p2)  }
   0x8   : > { %608 = vmatprep.subr.bf16.mxu0 (!%p140_p2), %v1769_v1  ;;  %1630 = vmatprep.subr.bf16.mxu1 (!%p140_p2), %v1769_v1  ;;  %v1679_v12 = vld [vmem:[%s2026_s1 + $0x48] sm:$0xff] (!%p140_p2)   ;;  %v1680_v13 = vld [vmem:[%s2026_s1 + $0x50] sm:$0xff] (!%p140_p2)   ;;  %v1681_v14 = vld [vmem:[%s2026_s1 + $0x58] sm:$0xff] (!%p140_p2)  }
   0x9   : > { %v1682_v15 = vld [vmem:[%s2026_s1 + $0x60] sm:$0xff] (!%p140_p2)   ;;  %v1683_v16 = vld [vmem:[%s2026_s1 + $0x68] sm:$0xff] (!%p140_p2)   ;;  %v1684_v17 = vld [vmem:[%s2026_s1 + $0x70] sm:$0xff] (!%p140_p2)  }
   0xa   : > { %v1685_v18 = vld [vmem:[%s2026_s1 + $0x78] sm:$0xff] (!%p140_p2)  }
   0xb   : > { %609 = vmatpush1.bf16.msra.mxu0 (!%p140_p2), %v1671_v2  ;;  %1646 = vmatpush1.bf16.msra.mxu1 (!%p140_p2), %v1671_v2 }
   0xc   : > { %610 = vmatprep.subr.bf16.mxu0 (!%p140_p2), %v1769_v1  ;;  %1631 = vmatprep.subr.bf16.mxu1 (!%p140_p2), %v1769_v1 }
   0xd   : > { %s2030_s16 = smov (!%p165_p3, %s164_s16), 99 }
   0xe   : > { %s1429_s23 = sshll.u32 %s2030_s16, 3 }
   0xf   : > { %611 = vmatpush1.bf16.msra.mxu0 %v1672_v3  ;;  %1647 = vmatpush1.bf16.msra.mxu1 %v1672_v3  ;;  %s1827_s28 = scalar_lea.vmem %s2025_s0, %s1429_s23 }
  0x10   : > { %612 = vmatprep.subr.bf16.mxu0 %v1769_v1  ;;  %1632 = vmatprep.subr.bf16.mxu1 %v1769_v1  ;;  %v1688_v6 = vld [vmem:[%s1827_s28 + $0x4] ss:$8 sps:$4 sm:$0xff]   ;;  %v1691_v8 = vld [vmem:[%s1827_s28 + $0xd4] ss:$8 sps:$4 sm:$0xff]   ;;  %v1686_v19 = vld [vmem:[%s1827_s28] ss:$8 sps:$4 sm:$0xff]  }
  0x11   : > { %638 = vmatprep.mubr.bf16.mxu0 %v1688_v6  ;;  %742 = vmatprep.mubr.bf16.mxu1 %v1691_v8  ;;  %v1689_v20 = vld [vmem:[%s1827_s28 + $0xd0] ss:$8 sps:$4 sm:$0xff]   ;;  %v1692_v21 = vld [vmem:[%s1827_s28 + $0x14] ss:$8 sps:$4 sm:$0xff]   ;;  %v1695_v22 = vld [vmem:[%s1827_s28 + $0xe4] ss:$8 sps:$4 sm:$0xff]  }
  0x12   : > { %v1694_v23 = vld [vmem:[%s1827_s28 + $0x10] ss:$8 sps:$4 sm:$0xff]   ;;  %v1697_v24 = vld [vmem:[%s1827_s28 + $0xe0] ss:$8 sps:$4 sm:$0xff]   ;;  %v1698_v25 = vld [vmem:[%s1827_s28 + $0x24] ss:$8 sps:$4 sm:$0xff]  }
  0x13   : > { %613 = vmatpush1.bf16.msra.mxu0 %v1673_v4  ;;  %1648 = vmatpush1.bf16.msra.mxu1 %v1673_v4  ;;  %v1701_v26 = vld [vmem:[%s1827_s28 + $0xf4] ss:$8 sps:$4 sm:$0xff]   ;;  %v1700_v27 = vld [vmem:[%s1827_s28 + $0x20] ss:$8 sps:$4 sm:$0xff]   ;;  %v1703_v28 = vld [vmem:[%s1827_s28 + $0xf0] ss:$8 sps:$4 sm:$0xff]  }
  0x14   : > { %614 = vmatprep.subr.bf16.mxu0 %v1769_v1  ;;  %1633 = vmatprep.subr.bf16.mxu1 %v1769_v1  ;;  %v1704_v29 = vld [vmem:[%s1827_s28 + $0x34] ss:$8 sps:$4 sm:$0xff]   ;;  %v1707_v30 = vld [vmem:[%s1827_s28 + $0x104] ss:$8 sps:$4 sm:$0xff]   ;;  %v1706_v31 = vld [vmem:[%s1827_s28 + $0x30] ss:$8 sps:$4 sm:$0xff]  }
  0x15   : > { %v1709_v32 = vld [vmem:[%s1827_s28 + $0x100] ss:$8 sps:$4 sm:$0xff]   ;;  %v1710_v33 = vld [vmem:[%s1827_s28 + $0x44] ss:$8 sps:$4 sm:$0xff]   ;;  %v1713_v34 = vld [vmem:[%s1827_s28 + $0x114] ss:$8 sps:$4 sm:$0xff]  }
  0x16   : > { %v1712_v35 = vld [vmem:[%s1827_s28 + $0x40] ss:$8 sps:$4 sm:$0xff]   ;;  %v1715_v36 = vld [vmem:[%s1827_s28 + $0x110] ss:$8 sps:$4 sm:$0xff]   ;;  %v1716_v37 = vld [vmem:[%s1827_s28 + $0x54] ss:$8 sps:$4 sm:$0xff]  }
  0x17   : > { %615 = vmatpush1.bf16.msra.mxu0 %v1674_v5  ;;  %1649 = vmatpush1.bf16.msra.mxu1 %v1674_v5  ;;  %v1719_v38 = vld [vmem:[%s1827_s28 + $0x124] ss:$8 sps:$4 sm:$0xff]   ;;  %v1718_v39 = vld [vmem:[%s1827_s28 + $0x50] ss:$8 sps:$4 sm:$0xff]   ;;  %v1721_v40 = vld [vmem:[%s1827_s28 + $0x120] ss:$8 sps:$4 sm:$0xff]  }
  0x18   : > { %616 = vmatprep.subr.bf16.mxu0 %v1769_v1  ;;  %1634 = vmatprep.subr.bf16.mxu1 %v1769_v1  ;;  %v1722_v41 = vld [vmem:[%s1827_s28 + $0x64] ss:$8 sps:$4 sm:$0xff]   ;;  %v1725_v42 = vld [vmem:[%s1827_s28 + $0x134] ss:$8 sps:$4 sm:$0xff]   ;;  %v1724_v43 = vld [vmem:[%s1827_s28 + $0x60] ss:$8 sps:$4 sm:$0xff]  }
  0x19   : > { %v1727_v44 = vld [vmem:[%s1827_s28 + $0x130] ss:$8 sps:$4 sm:$0xff]   ;;  %v1728_v45 = vld [vmem:[%s1827_s28 + $0x74] ss:$8 sps:$4 sm:$0xff]   ;;  %v1731_v46 = vld [vmem:[%s1827_s28 + $0x144] ss:$8 sps:$4 sm:$0xff]  }
  0x1a   : > { %v1730_v47 = vld [vmem:[%s1827_s28 + $0x70] ss:$8 sps:$4 sm:$0xff]   ;;  %v1733_v48 = vld [vmem:[%s1827_s28 + $0x140] ss:$8 sps:$4 sm:$0xff]   ;;  %v1734_v49 = vld [vmem:[%s1827_s28 + $0x84] ss:$8 sps:$4 sm:$0xff]  }
  0x1b   : > { %617 = vmatpush1.bf16.msra.mxu0 %v1675_v7  ;;  %1650 = vmatpush1.bf16.msra.mxu1 %v1675_v7  ;;  %v1737_v50 = vld [vmem:[%s1827_s28 + $0x154] ss:$8 sps:$4 sm:$0xff]   ;;  %v1736_v51 = vld [vmem:[%s1827_s28 + $0x80] ss:$8 sps:$4 sm:$0xff]   ;;  %v1739_v52 = vld [vmem:[%s1827_s28 + $0x150] ss:$8 sps:$4 sm:$0xff]  }
  0x1c   : > { %618 = vmatprep.subr.bf16.mxu0 %v1769_v1  ;;  %1635 = vmatprep.subr.bf16.mxu1 %v1769_v1  ;;  %v1740_v53 = vld [vmem:[%s1827_s28 + $0x94] ss:$8 sps:$4 sm:$0xff]   ;;  %v1743_v54 = vld [vmem:[%s1827_s28 + $0x164] ss:$8 sps:$4 sm:$0xff]   ;;  %v1742_v55 = vld [vmem:[%s1827_s28 + $0x90] ss:$8 sps:$4 sm:$0xff]  }
  0x1d   : > { %v1745_v56 = vld [vmem:[%s1827_s28 + $0x160] ss:$8 sps:$4 sm:$0xff]   ;;  %v1746_v57 = vld [vmem:[%s1827_s28 + $0xa4] ss:$8 sps:$4 sm:$0xff]   ;;  %v1749_v58 = vld [vmem:[%s1827_s28 + $0x174] ss:$8 sps:$4 sm:$0xff]  }
  0x1e   : > { %v1748_v59 = vld [vmem:[%s1827_s28 + $0xa0] ss:$8 sps:$4 sm:$0xff]   ;;  %v1751_v60 = vld [vmem:[%s1827_s28 + $0x170] ss:$8 sps:$4 sm:$0xff]   ;;  %v1752_v61 = vld [vmem:[%s1827_s28 + $0xb4] ss:$8 sps:$4 sm:$0xff]  }
  0x1f   : > { %619 = vmatpush1.bf16.msra.mxu0 %v1676_v9  ;;  %1651 = vmatpush1.bf16.msra.mxu1 %v1676_v9  ;;  %v1755_v62 = vld [vmem:[%s1827_s28 + $0x184] ss:$8 sps:$4 sm:$0xff]   ;;  %v1754_v63 = vld [vmem:[%s1827_s28 + $0xb0] ss:$8 sps:$4 sm:$0xff]   ;;  %v1757_v0 = vld [vmem:[%s1827_s28 + $0x180] ss:$8 sps:$4 sm:$0xff]  }
  0x20   : > { %620 = vmatprep.subr.bf16.mxu0 %v1769_v1  ;;  %1636 = vmatprep.subr.bf16.mxu1 %v1769_v1  ;;  %v1760_v2 = vld [vmem:[%s1827_s28 + $0xc0] ss:$8 sps:$4 sm:$0xff]  }
  0x21   : > { %v1939_v4 = vld [vmem:[%s2027_s2] ss:$0 sm:$0xff] }
  0x23   : > { %621 = vmatpush1.bf16.msra.mxu0 %v1677_v10  ;;  %1652 = vmatpush1.bf16.msra.mxu1 %v1677_v10 }
  0x24   : > { %622 = vmatprep.subr.bf16.mxu0 %v1769_v1  ;;  %1637 = vmatprep.subr.bf16.mxu1 %v1769_v1 }
  0x27   : > { %623 = vmatpush1.bf16.msra.mxu0 %v1678_v11  ;;  %1653 = vmatpush1.bf16.msra.mxu1 %v1678_v11 }
  0x28   : > { %624 = vmatprep.subr.bf16.mxu0 %v1769_v1  ;;  %1638 = vmatprep.subr.bf16.mxu1 %v1769_v1 }
  0x2b   : > { %625 = vmatpush1.bf16.msra.mxu0 %v1679_v12  ;;  %1654 = vmatpush1.bf16.msra.mxu1 %v1679_v12 }
  0x2c   : > { %626 = vmatprep.subr.bf16.mxu0 %v1769_v1  ;;  %1639 = vmatprep.subr.bf16.mxu1 %v1769_v1 }
  0x2f   : > { %627 = vmatpush1.bf16.msra.mxu0 %v1680_v13  ;;  %1655 = vmatpush1.bf16.msra.mxu1 %v1680_v13 }
  0x30   : > { %628 = vmatprep.subr.bf16.mxu0 %v1769_v1  ;;  %1640 = vmatprep.subr.bf16.mxu1 %v1769_v1 }
  0x33   : > { %629 = vmatpush1.bf16.msra.mxu0 %v1681_v14  ;;  %1656 = vmatpush1.bf16.msra.mxu1 %v1681_v14 }
  0x34   : > { %630 = vmatprep.subr.bf16.mxu0 %v1769_v1  ;;  %1641 = vmatprep.subr.bf16.mxu1 %v1769_v1 }
  0x37   : > { %631 = vmatpush1.bf16.msra.mxu0 %v1682_v15  ;;  %1657 = vmatpush1.bf16.msra.mxu1 %v1682_v15 }
  0x38   : > { %632 = vmatprep.subr.bf16.mxu0 %v1769_v1  ;;  %1642 = vmatprep.subr.bf16.mxu1 %v1769_v1 }
  0x3b   : > { %633 = vmatpush1.bf16.msra.mxu0 %v1683_v16  ;;  %1658 = vmatpush1.bf16.msra.mxu1 %v1683_v16 }
  0x3c   : > { %634 = vmatprep.subr.bf16.mxu0 %v1769_v1  ;;  %1643 = vmatprep.subr.bf16.mxu1 %v1769_v1 }
  0x3f   : > { %635 = vmatpush1.bf16.msra.mxu0 %v1684_v17  ;;  %1659 = vmatpush1.bf16.msra.mxu1 %v1684_v17 }
  0x40   : > { %636 = vmatprep.subr.bf16.mxu0 %v1769_v1  ;;  %1644 = vmatprep.subr.bf16.mxu1 %v1769_v1  ;;  %v1758_v1 = vld [vmem:[%s1827_s28 + $0xc4] ss:$8 sps:$4 sm:$0xff]   ;;  %s1309_s28 = sshll.u32 %s2030_s16, 2 }
  0x41   : > { %s1949_s4 = scalar_lea.vmem %s2028_s3, %s1309_s28 }
  0x43   : > { %637 = vmatpush1.bf16.msra.mxu0 %v1685_v18  ;;  %1660 = vmatpush1.bf16.msra.mxu1 %v1685_v18 }
  0x46   : > { %639 = vmatmul.mubr.bf16.vlgmr.msra.gmra.mrb[0].mxu0 %v1686_v19  ;;  %743 = vmatmul.mubr.bf16.vlgmr.msra.gmra.mrb[0].mxu1 %v1689_v20 }
  0x47   : > { %646 = vmatprep.mubr.bf16.mxu0 %v1692_v21  ;;  %750 = vmatprep.mubr.bf16.mxu1 %v1695_v22 }
  0x4e   : > { %647 = vmatmul.mubr.bf16.gmra.mrb[4].mxu0 %v1694_v23  ;;  %751 = vmatmul.mubr.bf16.gmra.mrb[4].mxu1 %v1697_v24 }
  0x4f   : > { %654 = vmatprep.mubr.bf16.mxu0 %v1698_v25  ;;  %758 = vmatprep.mubr.bf16.mxu1 %v1701_v26 }
  0x56   : > { %655 = vmatmul.mubr.bf16.gmra.mrb[8].mxu0 %v1700_v27  ;;  %759 = vmatmul.mubr.bf16.gmra.mrb[8].mxu1 %v1703_v28 }
  0x57   : > { %662 = vmatprep.mubr.bf16.mxu0 %v1704_v29  ;;  %766 = vmatprep.mubr.bf16.mxu1 %v1707_v30 }
  0x5e   : > { %663 = vmatmul.mubr.bf16.gmra.mrb[12].mxu0 %v1706_v31  ;;  %767 = vmatmul.mubr.bf16.gmra.mrb[12].mxu1 %v1709_v32 }
  0x5f   : > { %670 = vmatprep.mubr.bf16.mxu0 %v1710_v33  ;;  %774 = vmatprep.mubr.bf16.mxu1 %v1713_v34 }
  0x66   : > { %671 = vmatmul.mubr.bf16.gmra.mrb[16].mxu0 %v1712_v35  ;;  %775 = vmatmul.mubr.bf16.gmra.mrb[16].mxu1 %v1715_v36 }
  0x67   : > { %678 = vmatprep.mubr.bf16.mxu0 %v1716_v37  ;;  %782 = vmatprep.mubr.bf16.mxu1 %v1719_v38 }
  0x6e   : > { %679 = vmatmul.mubr.bf16.gmra.mrb[20].mxu0 %v1718_v39  ;;  %783 = vmatmul.mubr.bf16.gmra.mrb[20].mxu1 %v1721_v40 }
  0x6f   : > { %686 = vmatprep.mubr.bf16.mxu0 %v1722_v41  ;;  %790 = vmatprep.mubr.bf16.mxu1 %v1725_v42 }
  0x76   : > { %687 = vmatmul.mubr.bf16.gmra.mrb[24].mxu0 %v1724_v43  ;;  %791 = vmatmul.mubr.bf16.gmra.mrb[24].mxu1 %v1727_v44 }
  0x77   : > { %694 = vmatprep.mubr.bf16.mxu0 %v1728_v45  ;;  %798 = vmatprep.mubr.bf16.mxu1 %v1731_v46 }
  0x7e   : > { %695 = vmatmul.mubr.bf16.gmra.mrb[28].mxu0 %v1730_v47  ;;  %799 = vmatmul.mubr.bf16.gmra.mrb[28].mxu1 %v1733_v48 }
  0x7f   : > { %702 = vmatprep.mubr.bf16.mxu0 %v1734_v49  ;;  %806 = vmatprep.mubr.bf16.mxu1 %v1737_v50 }
  0x86   : > { %703 = vmatmul.mubr.bf16.gmra.mrb[32].mxu0 %v1736_v51  ;;  %807 = vmatmul.mubr.bf16.gmra.mrb[32].mxu1 %v1739_v52 }
  0x87   : > { %710 = vmatprep.mubr.bf16.mxu0 %v1740_v53  ;;  %814 = vmatprep.mubr.bf16.mxu1 %v1743_v54 }
  0x8e   : > { %711 = vmatmul.mubr.bf16.gmra.mrb[36].mxu0 %v1742_v55  ;;  %815 = vmatmul.mubr.bf16.gmra.mrb[36].mxu1 %v1745_v56 }
  0x8f   : > { %718 = vmatprep.mubr.bf16.mxu0 %v1746_v57  ;;  %822 = vmatprep.mubr.bf16.mxu1 %v1749_v58 }
  0x96   : > { %719 = vmatmul.mubr.bf16.gmra.mrb[40].mxu0 %v1748_v59  ;;  %823 = vmatmul.mubr.bf16.gmra.mrb[40].mxu1 %v1751_v60 }
  0x97   : > { %726 = vmatprep.mubr.bf16.mxu0 %v1752_v61  ;;  %830 = vmatprep.mubr.bf16.mxu1 %v1755_v62 }
  0x9e   : > { %727 = vmatmul.mubr.bf16.gmra.mrb[44].mxu0 %v1754_v63  ;;  %831 = vmatmul.mubr.bf16.gmra.mrb[44].mxu1 %v1757_v0 }
  0x9f   : > { %734 = vmatprep.mubr.bf16.mxu0 %v1758_v1 }
  0xa6   : > { %735 = vmatmul.mubr.bf16.gmra.mrb[48].mxu0 %v1760_v2 }
 0x119   : > { %v640_v3 = vpop.f32.mrb[0].mxu0  ;;  %v744_v5 = vpop.f32.mrb[0].mxu1 }
 0x11a   : > { %v839_v6 = vmul.f32 0.003921569, %v640_v3  ;;  %v642_v7 = vpop.f32.mrb[1].mxu0  ;;  %v865_v8 = vmul.f32 0.003921569, %v744_v5  ;;  %v746_v9 = vpop.f32.mrb[1].mxu1 }
 0x11b   : > { %v643_v10 = vpop.f32.mrb[2].mxu0  ;;  %v747_v11 = vpop.f32.mrb[2].mxu1 }
 0x11c   : > { %v896_v12 = vadd.f32 %v1939_v4, %v839_v6  ;;  %v840_v13 = vmul.f32 0.003921569, %v643_v10  ;;  %v645_v14 = vpop.f32.mrb[3].mxu0  ;;  %v922_v15 = vadd.f32 %v1939_v4, %v865_v8  ;;  %v866_v16 = vmul.f32 0.003921569, %v747_v11  ;;  %v749_v17 = vpop.f32.mrb[3].mxu1 }
 0x11e   : > { %v897_v18 = vadd.f32 %v1939_v4, %v840_v13  ;;  %v972_v19 = vmax.f32 %v922_v15, 0.0  ;;  %v923_v20 = vadd.f32 %v1939_v4, %v866_v16  ;;  %v946_v21 = vmax.f32 %v896_v12, 0.0 }
 0x120   : > { %v947_v22 = vmax.f32 %v897_v18, 0.0  ;;  %v973_v23 = vmax.f32 %v923_v20, 0.0 }
 0x121   : > { %v648_v24 = vpop.f32.mrb[4].mxu0  ;;  %v752_v25 = vpop.f32.mrb[4].mxu1 }
 0x122   : > { %v1483_v26 = vpack.c.bf16 %v947_v22, %v946_v21  ;;  %v1548_v27 = vpack.c.bf16 %v973_v23, %v972_v19  ;;  %v841_v28 = vmul.f32 0.003921569, %v648_v24  ;;  %v650_v29 = vpop.f32.mrb[5].mxu0  ;;  %v867_v30 = vmul.f32 0.003921569, %v752_v25  ;;  %v754_v31 = vpop.f32.mrb[5].mxu1 }
 0x123   : > { %v651_v32 = vpop.f32.mrb[6].mxu0  ;;  %v755_v33 = vpop.f32.mrb[6].mxu1 }
 0x124   : > { %1484 = vst [vmem:[%s1949_s4] sm:$0xff] %v1483_v26   ;;  %1617 = vst [vmem:[%s1949_s4 + $0x68] sm:$0xff] %v1548_v27   ;;  %v898_v34 = vadd.f32 %v1939_v4, %v841_v28  ;;  %v842_v35 = vmul.f32 0.003921569, %v651_v32  ;;  %v653_v36 = vpop.f32.mrb[7].mxu0  ;;  %v924_v37 = vadd.f32 %v1939_v4, %v867_v30  ;;  %v868_v38 = vmul.f32 0.003921569, %v755_v33 }
 0x125   : > { %v757_v39 = vpop.f32.mrb[7].mxu1 }
 0x126   : > { %v899_v40 = vadd.f32 %v1939_v4, %v842_v35  ;;  %v974_v41 = vmax.f32 %v924_v37, 0.0  ;;  %v925_v42 = vadd.f32 %v1939_v4, %v868_v38  ;;  %v948_v43 = vmax.f32 %v898_v34, 0.0 }
 0x128   : > { %v949_v44 = vmax.f32 %v899_v40, 0.0  ;;  %v975_v45 = vmax.f32 %v925_v42, 0.0 }
 0x129   : > { %v656_v46 = vpop.f32.mrb[8].mxu0  ;;  %v760_v47 = vpop.f32.mrb[8].mxu1 }
 0x12a   : > { %v1488_v48 = vpack.c.bf16 %v949_v44, %v948_v43  ;;  %v1553_v49 = vpack.c.bf16 %v975_v45, %v974_v41  ;;  %v843_v50 = vmul.f32 0.003921569, %v656_v46  ;;  %v658_v51 = vpop.f32.mrb[9].mxu0  ;;  %v869_v52 = vmul.f32 0.003921569, %v760_v47  ;;  %v762_v53 = vpop.f32.mrb[9].mxu1 }
 0x12b   : > { %v659_v54 = vpop.f32.mrb[10].mxu0  ;;  %v763_v55 = vpop.f32.mrb[10].mxu1 }
 0x12c   : > { %1605 = vst [vmem:[%s1949_s4 + $0x8] sm:$0xff] %v1488_v48   ;;  %1618 = vst [vmem:[%s1949_s4 + $0x70] sm:$0xff] %v1553_v49   ;;  %v900_v56 = vadd.f32 %v1939_v4, %v843_v50  ;;  %v844_v57 = vmul.f32 0.003921569, %v659_v54  ;;  %v661_v58 = vpop.f32.mrb[11].mxu0  ;;  %v926_v59 = vadd.f32 %v1939_v4, %v869_v52  ;;  %v765_v61 = vpop.f32.mrb[11].mxu1 }
 0x12d   : > { %v870_v60 = vmul.f32 0.003921569, %v763_v55 }
 0x12e   : > { %v901_v62 = vadd.f32 %v1939_v4, %v844_v57  ;;  %v976_v63 = vmax.f32 %v926_v59, 0.0  ;;  %v950_v1 = vmax.f32 %v900_v56, 0.0 }
 0x12f   : > { %v927_v0 = vadd.f32 %v1939_v4, %v870_v60 }
 0x130   : > { %v951_v2 = vmax.f32 %v901_v62, 0.0 }
 0x131   : > { %v977_v3 = vmax.f32 %v927_v0, 0.0  ;;  %v664_v5 = vpop.f32.mrb[12].mxu0  ;;  %v768_v6 = vpop.f32.mrb[12].mxu1 }
 0x132   : > { %v1493_v7 = vpack.c.bf16 %v951_v2, %v950_v1  ;;  %v845_v9 = vmul.f32 0.003921569, %v664_v5  ;;  %v666_v10 = vpop.f32.mrb[13].mxu0  ;;  %v871_v11 = vmul.f32 0.003921569, %v768_v6  ;;  %v770_v12 = vpop.f32.mrb[13].mxu1 }
 0x133   : > { %v1558_v8 = vpack.c.bf16 %v977_v3, %v976_v63  ;;  %v667_v13 = vpop.f32.mrb[14].mxu0  ;;  %v771_v14 = vpop.f32.mrb[14].mxu1 }
 0x134   : > { %1606 = vst [vmem:[%s1949_s4 + $0x10] sm:$0xff] %v1493_v7   ;;  %v902_v15 = vadd.f32 %v1939_v4, %v845_v9  ;;  %v846_v16 = vmul.f32 0.003921569, %v667_v13  ;;  %v669_v17 = vpop.f32.mrb[15].mxu0  ;;  %v928_v18 = vadd.f32 %v1939_v4, %v871_v11  ;;  %v872_v19 = vmul.f32 0.003921569, %v771_v14 }
 0x135   : > { %1619 = vst [vmem:[%s1949_s4 + $0x78] sm:$0xff] %v1558_v8   ;;  %v773_v20 = vpop.f32.mrb[15].mxu1 }
 0x136   : > { %v903_v21 = vadd.f32 %v1939_v4, %v846_v16  ;;  %v978_v22 = vmax.f32 %v928_v18, 0.0  ;;  %v929_v23 = vadd.f32 %v1939_v4, %v872_v19  ;;  %v952_v24 = vmax.f32 %v902_v15, 0.0 }
 0x138   : > { %v953_v25 = vmax.f32 %v903_v21, 0.0  ;;  %v979_v26 = vmax.f32 %v929_v23, 0.0 }
 0x139   : > { %v672_v27 = vpop.f32.mrb[16].mxu0  ;;  %v776_v28 = vpop.f32.mrb[16].mxu1 }
 0x13a   : > { %v1498_v29 = vpack.c.bf16 %v953_v25, %v952_v24  ;;  %v1563_v30 = vpack.c.bf16 %v979_v26, %v978_v22  ;;  %v847_v31 = vmul.f32 0.003921569, %v672_v27  ;;  %v674_v32 = vpop.f32.mrb[17].mxu0  ;;  %v873_v33 = vmul.f32 0.003921569, %v776_v28  ;;  %v778_v34 = vpop.f32.mrb[17].mxu1 }
 0x13b   : > { %v675_v35 = vpop.f32.mrb[18].mxu0  ;;  %v779_v36 = vpop.f32.mrb[18].mxu1 }
 0x13c   : > { %1607 = vst [vmem:[%s1949_s4 + $0x18] sm:$0xff] %v1498_v29   ;;  %1620 = vst [vmem:[%s1949_s4 + $0x80] sm:$0xff] %v1563_v30   ;;  %v904_v37 = vadd.f32 %v1939_v4, %v847_v31  ;;  %v848_v38 = vmul.f32 0.003921569, %v675_v35  ;;  %v677_v39 = vpop.f32.mrb[19].mxu0  ;;  %v930_v40 = vadd.f32 %v1939_v4, %v873_v33  ;;  %v781_v42 = vpop.f32.mrb[19].mxu1 }
 0x13d   : > { %v874_v41 = vmul.f32 0.003921569, %v779_v36 }
 0x13e   : > { %v905_v43 = vadd.f32 %v1939_v4, %v848_v38  ;;  %v980_v44 = vmax.f32 %v930_v40, 0.0  ;;  %v954_v46 = vmax.f32 %v904_v37, 0.0 }
 0x13f   : > { %v931_v45 = vadd.f32 %v1939_v4, %v874_v41 }
 0x140   : > { %v955_v47 = vmax.f32 %v905_v43, 0.0 }
 0x141   : > { %v981_v48 = vmax.f32 %v931_v45, 0.0  ;;  %v680_v49 = vpop.f32.mrb[20].mxu0  ;;  %v784_v50 = vpop.f32.mrb[20].mxu1 }
 0x142   : > { %v1503_v51 = vpack.c.bf16 %v955_v47, %v954_v46  ;;  %v849_v53 = vmul.f32 0.003921569, %v680_v49  ;;  %v682_v54 = vpop.f32.mrb[21].mxu0  ;;  %v875_v55 = vmul.f32 0.003921569, %v784_v50  ;;  %v786_v56 = vpop.f32.mrb[21].mxu1 }
 0x143   : > { %v1568_v52 = vpack.c.bf16 %v981_v48, %v980_v44  ;;  %v683_v57 = vpop.f32.mrb[22].mxu0  ;;  %v787_v58 = vpop.f32.mrb[22].mxu1 }
 0x144   : > { %1608 = vst [vmem:[%s1949_s4 + $0x20] sm:$0xff] %v1503_v51   ;;  %v906_v59 = vadd.f32 %v1939_v4, %v849_v53  ;;  %v850_v60 = vmul.f32 0.003921569, %v683_v57  ;;  %v685_v61 = vpop.f32.mrb[23].mxu0  ;;  %v932_v62 = vadd.f32 %v1939_v4, %v875_v55  ;;  %v876_v63 = vmul.f32 0.003921569, %v787_v58 }
 0x145   : > { %1621 = vst [vmem:[%s1949_s4 + $0x88] sm:$0xff] %v1568_v52   ;;  %v789_v0 = vpop.f32.mrb[23].mxu1 }
 0x146   : > { %v907_v1 = vadd.f32 %v1939_v4, %v850_v60  ;;  %v982_v2 = vmax.f32 %v932_v62, 0.0  ;;  %v933_v3 = vadd.f32 %v1939_v4, %v876_v63  ;;  %v956_v5 = vmax.f32 %v906_v59, 0.0 }
 0x148   : > { %v957_v6 = vmax.f32 %v907_v1, 0.0  ;;  %v983_v7 = vmax.f32 %v933_v3, 0.0 }
 0x149   : > { %v688_v8 = vpop.f32.mrb[24].mxu0  ;;  %v792_v9 = vpop.f32.mrb[24].mxu1 }
 0x14a   : > { %v1508_v10 = vpack.c.bf16 %v957_v6, %v956_v5  ;;  %v1573_v11 = vpack.c.bf16 %v983_v7, %v982_v2  ;;  %v851_v12 = vmul.f32 0.003921569, %v688_v8  ;;  %v690_v13 = vpop.f32.mrb[25].mxu0  ;;  %v877_v14 = vmul.f32 0.003921569, %v792_v9  ;;  %v794_v15 = vpop.f32.mrb[25].mxu1 }
 0x14b   : > { %v691_v16 = vpop.f32.mrb[26].mxu0  ;;  %v795_v17 = vpop.f32.mrb[26].mxu1 }
 0x14c   : > { %1609 = vst [vmem:[%s1949_s4 + $0x28] sm:$0xff] %v1508_v10   ;;  %1622 = vst [vmem:[%s1949_s4 + $0x90] sm:$0xff] %v1573_v11   ;;  %v908_v18 = vadd.f32 %v1939_v4, %v851_v12  ;;  %v852_v19 = vmul.f32 0.003921569, %v691_v16  ;;  %v693_v20 = vpop.f32.mrb[27].mxu0  ;;  %v934_v21 = vadd.f32 %v1939_v4, %v877_v14  ;;  %v797_v23 = vpop.f32.mrb[27].mxu1 }
 0x14d   : > { %v878_v22 = vmul.f32 0.003921569, %v795_v17 }
 0x14e   : > { %v909_v24 = vadd.f32 %v1939_v4, %v852_v19  ;;  %v984_v25 = vmax.f32 %v934_v21, 0.0  ;;  %v958_v27 = vmax.f32 %v908_v18, 0.0 }
 0x14f   : > { %v935_v26 = vadd.f32 %v1939_v4, %v878_v22 }
 0x150   : > { %v959_v28 = vmax.f32 %v909_v24, 0.0 }
 0x151   : > { %v985_v29 = vmax.f32 %v935_v26, 0.0  ;;  %v696_v30 = vpop.f32.mrb[28].mxu0  ;;  %v800_v31 = vpop.f32.mrb[28].mxu1 }
 0x152   : > { %v1513_v32 = vpack.c.bf16 %v959_v28, %v958_v27  ;;  %v853_v34 = vmul.f32 0.003921569, %v696_v30  ;;  %v698_v35 = vpop.f32.mrb[29].mxu0  ;;  %v879_v36 = vmul.f32 0.003921569, %v800_v31  ;;  %v802_v37 = vpop.f32.mrb[29].mxu1 }
 0x153   : > { %v1578_v33 = vpack.c.bf16 %v985_v29, %v984_v25  ;;  %v699_v38 = vpop.f32.mrb[30].mxu0  ;;  %v803_v39 = vpop.f32.mrb[30].mxu1 }
 0x154   : > { %1610 = vst [vmem:[%s1949_s4 + $0x30] sm:$0xff] %v1513_v32   ;;  %v910_v40 = vadd.f32 %v1939_v4, %v853_v34  ;;  %v854_v41 = vmul.f32 0.003921569, %v699_v38  ;;  %v701_v42 = vpop.f32.mrb[31].mxu0  ;;  %v936_v43 = vadd.f32 %v1939_v4, %v879_v36  ;;  %v880_v44 = vmul.f32 0.003921569, %v803_v39 }
 0x155   : > { %1623 = vst [vmem:[%s1949_s4 + $0x98] sm:$0xff] %v1578_v33   ;;  %v805_v45 = vpop.f32.mrb[31].mxu1 }
 0x156   : > { %v911_v46 = vadd.f32 %v1939_v4, %v854_v41  ;;  %v986_v47 = vmax.f32 %v936_v43, 0.0  ;;  %v937_v48 = vadd.f32 %v1939_v4, %v880_v44  ;;  %v960_v49 = vmax.f32 %v910_v40, 0.0 }
 0x158   : > { %v961_v50 = vmax.f32 %v911_v46, 0.0  ;;  %v987_v51 = vmax.f32 %v937_v48, 0.0 }
 0x159   : > { %v704_v52 = vpop.f32.mrb[32].mxu0  ;;  %v808_v53 = vpop.f32.mrb[32].mxu1 }
 0x15a   : > { %v1518_v54 = vpack.c.bf16 %v961_v50, %v960_v49  ;;  %v1583_v55 = vpack.c.bf16 %v987_v51, %v986_v47  ;;  %v855_v56 = vmul.f32 0.003921569, %v704_v52  ;;  %v706_v57 = vpop.f32.mrb[33].mxu0  ;;  %v881_v58 = vmul.f32 0.003921569, %v808_v53  ;;  %v810_v59 = vpop.f32.mrb[33].mxu1 }
 0x15b   : > { %v707_v60 = vpop.f32.mrb[34].mxu0  ;;  %v811_v61 = vpop.f32.mrb[34].mxu1 }
 0x15c   : > { %1611 = vst [vmem:[%s1949_s4 + $0x38] sm:$0xff] %v1518_v54   ;;  %1624 = vst [vmem:[%s1949_s4 + $0xa0] sm:$0xff] %v1583_v55   ;;  %v912_v62 = vadd.f32 %v1939_v4, %v855_v56  ;;  %v856_v63 = vmul.f32 0.003921569, %v707_v60  ;;  %v709_v0 = vpop.f32.mrb[35].mxu0  ;;  %v938_v1 = vadd.f32 %v1939_v4, %v881_v58  ;;  %v813_v3 = vpop.f32.mrb[35].mxu1 }
 0x15d   : > { %v882_v2 = vmul.f32 0.003921569, %v811_v61 }
 0x15e   : > { %v913_v5 = vadd.f32 %v1939_v4, %v856_v63  ;;  %v988_v6 = vmax.f32 %v938_v1, 0.0  ;;  %v962_v8 = vmax.f32 %v912_v62, 0.0 }
 0x15f   : > { %v939_v7 = vadd.f32 %v1939_v4, %v882_v2 }
 0x160   : > { %v963_v9 = vmax.f32 %v913_v5, 0.0 }
 0x161   : > { %v989_v10 = vmax.f32 %v939_v7, 0.0  ;;  %v712_v11 = vpop.f32.mrb[36].mxu0  ;;  %v816_v12 = vpop.f32.mrb[36].mxu1 }
 0x162   : > { %v1523_v13 = vpack.c.bf16 %v963_v9, %v962_v8  ;;  %v857_v15 = vmul.f32 0.003921569, %v712_v11  ;;  %v714_v16 = vpop.f32.mrb[37].mxu0  ;;  %v883_v17 = vmul.f32 0.003921569, %v816_v12  ;;  %v818_v18 = vpop.f32.mrb[37].mxu1 }
 0x163   : > { %v1588_v14 = vpack.c.bf16 %v989_v10, %v988_v6  ;;  %v715_v19 = vpop.f32.mrb[38].mxu0  ;;  %v819_v20 = vpop.f32.mrb[38].mxu1 }
 0x164   : > { %1612 = vst [vmem:[%s1949_s4 + $0x40] sm:$0xff] %v1523_v13   ;;  %v914_v21 = vadd.f32 %v1939_v4, %v857_v15  ;;  %v858_v22 = vmul.f32 0.003921569, %v715_v19  ;;  %v717_v23 = vpop.f32.mrb[39].mxu0  ;;  %v940_v24 = vadd.f32 %v1939_v4, %v883_v17  ;;  %v884_v25 = vmul.f32 0.003921569, %v819_v20 }
 0x165   : > { %1625 = vst [vmem:[%s1949_s4 + $0xa8] sm:$0xff] %v1588_v14   ;;  %v821_v26 = vpop.f32.mrb[39].mxu1 }
 0x166   : > { %v915_v27 = vadd.f32 %v1939_v4, %v858_v22  ;;  %v990_v28 = vmax.f32 %v940_v24, 0.0  ;;  %v941_v29 = vadd.f32 %v1939_v4, %v884_v25  ;;  %v964_v30 = vmax.f32 %v914_v21, 0.0 }
 0x168   : > { %v965_v31 = vmax.f32 %v915_v27, 0.0  ;;  %v991_v32 = vmax.f32 %v941_v29, 0.0 }
 0x169   : > { %v720_v33 = vpop.f32.mrb[40].mxu0  ;;  %v824_v34 = vpop.f32.mrb[40].mxu1 }
 0x16a   : > { %v1528_v35 = vpack.c.bf16 %v965_v31, %v964_v30  ;;  %v1593_v36 = vpack.c.bf16 %v991_v32, %v990_v28  ;;  %v859_v37 = vmul.f32 0.003921569, %v720_v33  ;;  %v722_v38 = vpop.f32.mrb[41].mxu0  ;;  %v885_v39 = vmul.f32 0.003921569, %v824_v34  ;;  %v826_v40 = vpop.f32.mrb[41].mxu1 }
 0x16b   : > { %v723_v41 = vpop.f32.mrb[42].mxu0  ;;  %v827_v42 = vpop.f32.mrb[42].mxu1 }
 0x16c   : > { %1613 = vst [vmem:[%s1949_s4 + $0x48] sm:$0xff] %v1528_v35   ;;  %1626 = vst [vmem:[%s1949_s4 + $0xb0] sm:$0xff] %v1593_v36   ;;  %v916_v43 = vadd.f32 %v1939_v4, %v859_v37  ;;  %v860_v44 = vmul.f32 0.003921569, %v723_v41  ;;  %v725_v45 = vpop.f32.mrb[43].mxu0  ;;  %v942_v46 = vadd.f32 %v1939_v4, %v885_v39  ;;  %v829_v48 = vpop.f32.mrb[43].mxu1 }
 0x16d   : > { %v886_v47 = vmul.f32 0.003921569, %v827_v42 }
 0x16e   : > { %v917_v49 = vadd.f32 %v1939_v4, %v860_v44  ;;  %v992_v50 = vmax.f32 %v942_v46, 0.0  ;;  %v966_v52 = vmax.f32 %v916_v43, 0.0 }
 0x16f   : > { %v943_v51 = vadd.f32 %v1939_v4, %v886_v47 }
 0x170   : > { %v967_v53 = vmax.f32 %v917_v49, 0.0 }
 0x171   : > { %v993_v54 = vmax.f32 %v943_v51, 0.0  ;;  %v728_v55 = vpop.f32.mrb[44].mxu0  ;;  %v832_v56 = vpop.f32.mrb[44].mxu1 }
 0x172   : > { %v1533_v57 = vpack.c.bf16 %v967_v53, %v966_v52  ;;  %v861_v59 = vmul.f32 0.003921569, %v728_v55  ;;  %v730_v60 = vpop.f32.mrb[45].mxu0  ;;  %v887_v61 = vmul.f32 0.003921569, %v832_v56  ;;  %v834_v62 = vpop.f32.mrb[45].mxu1 }
 0x173   : > { %v1598_v58 = vpack.c.bf16 %v993_v54, %v992_v50  ;;  %v731_v63 = vpop.f32.mrb[46].mxu0  ;;  %v835_v0 = vpop.f32.mrb[46].mxu1 }
 0x174   : > { %1614 = vst [vmem:[%s1949_s4 + $0x50] sm:$0xff] %v1533_v57   ;;  %v918_v1 = vadd.f32 %v1939_v4, %v861_v59  ;;  %v862_v2 = vmul.f32 0.003921569, %v731_v63  ;;  %v733_v3 = vpop.f32.mrb[47].mxu0  ;;  %v944_v5 = vadd.f32 %v1939_v4, %v887_v61  ;;  %v888_v6 = vmul.f32 0.003921569, %v835_v0 }
 0x175   : > { %1627 = vst [vmem:[%s1949_s4 + $0xb8] sm:$0xff] %v1598_v58   ;;  %v837_v7 = vpop.f32.mrb[47].mxu1 }
 0x176   : > { %v919_v8 = vadd.f32 %v1939_v4, %v862_v2  ;;  %v994_v9 = vmax.f32 %v944_v5, 0.0  ;;  %v945_v10 = vadd.f32 %v1939_v4, %v888_v6  ;;  %v968_v11 = vmax.f32 %v918_v1, 0.0 }
 0x178   : > { %v969_v12 = vmax.f32 %v919_v8, 0.0  ;;  %v995_v13 = vmax.f32 %v945_v10, 0.0 }
 0x179   : > { %v736_v14 = vpop.f32.mrb[48].mxu0 }
 0x17a   : > { %v1538_v15 = vpack.c.bf16 %v969_v12, %v968_v11  ;;  %v1603_v16 = vpack.c.bf16 %v995_v13, %v994_v9  ;;  %v863_v17 = vmul.f32 0.003921569, %v736_v14  ;;  %v738_v18 = vpop.f32.mrb[49].mxu0 }
 0x17b   : > { %v739_v19 = vpop.f32.mrb[50].mxu0 }
 0x17c   : > { %1615 = vst [vmem:[%s1949_s4 + $0x58] sm:$0xff] %v1538_v15   ;;  %1628 = vst [vmem:[%s1949_s4 + $0xc0] sm:$0xff] %v1603_v16   ;;  %v920_v20 = vadd.f32 %v1939_v4, %v863_v17  ;;  %v864_v21 = vmul.f32 0.003921569, %v739_v19  ;;  %v741_v22 = vpop.f32.mrb[51].mxu0 }
 0x17e   : > { %v921_v23 = vadd.f32 %v1939_v4, %v864_v21  ;;  %v970_v24 = vmax.f32 %v920_v20, 0.0 }
 0x180   : > { %v971_v25 = vmax.f32 %v921_v23, 0.0 }
 0x182   : > { %v1543_v26 = vpack.c.bf16 %v971_v25, %v970_v24 }
 0x184   : > { %1616 = vst [vmem:[%s1949_s4 + $0x60] sm:$0xff] %v1543_v26  }
 0x185 PF: > { %s13_s12 = sadd.s32 1, %s1767_s12  }
 0x186   : > { %p10_p4 = scmp.ge.s32.totalorder %s13_s12, 4  }
 0x188   :  { %12 = sbr.rel (!%p10_p4) target bundleno = 1 (0x1), region = 62 }

// kernel: policy_net_forward.4
= control target key start
LH: loop header
LB: loop body
LE: loop exit
PB: predicated region body
PF: predicated region fallthrough
CT: control target
= control target key end

     0   :  { %s1583_s12 = smov 0   ;;  %s1585_s13 = smov 0   ;;  %s1824_s0 = inlined_call_operand.vmem [shape: bf16[162,512], index: 0, kind: input, shape index: {}]   ;;  %s1825_s1 = inlined_call_operand.vmem [shape: bf16[512,128], index: 1, kind: input, shape index: {}]   ;;  %s1826_s2 = inlined_call_operand.vmem [shape: f32[1,128], index: 2, kind: input, shape index: {}]   ;;  %s1827_s3 = inlined_call_operand.vmem [shape: bf16[162,128], index: 3, kind: output, shape index: {}]  }
   0x1   :  { %s1587_s14 = smov 0  }
   0x2 LB: > { %s1596_s15 = sadd.s32 4294967295, %s1529_s14   ;;  %s1598_s16 = sadd.s32 1, %s1529_s14   ;;  %s1529_s14 = sphi %s1587_s14, %s1834_s14   ;;  %s1525_s13 = sphi %s1585_s13, %s1833_s13   ;;  %s1521_s12 = sphi %s1583_s12, %s1832_s12  }
   0x3   : > { %s85_s17 = ssub.s32 %s1529_s14, %s1598_s16  ;;  %s88_s18 = sadd.s32 1, %s1525_s13 }
   0x4   : > { %p86_p0 = scmp.eq.s32.totalorder %s85_s17, 0  ;;  %p98_p1 = scmp.ne.s32.totalorder %s1525_s13, %s1521_s12 }
   0x5   : > { %p99_p2 = scmp.eq.s32.totalorder %s1596_s15, 1  ;;  %p1086_p3 = scmp.ge.s32.totalorder %s1529_s14, 1 }
   0x6   : > { %s1606_s19 = scalar_select %p86_p0, %s1525_s13, %s88_s18  }
   0x7   : > { %p1608_p4 = por %p99_p2, %p98_p1  ;;  %p149_p5 = scmp.lt.s32.totalorder %s1529_s14, 3 }
   0x9   : > { %p150_p6 = pnand %p1086_p3, %p149_p5 }
   0xa   : > { %v1405_v0 = vld [vmem:[%s1825_s1 + $0x40] sm:$0xff] (!%p150_p6)   ;;  %v1409_v4 = vld [vmem:[%s1825_s1 + $0x48] sm:$0xff] (!%p150_p6)   ;;  %v1413_v8 = vld [vmem:[%s1825_s1 + $0x50] sm:$0xff] (!%p150_p6)   ;;  %s1658_s30 = smul.u32 (!%p150_p6), 11, %s1596_s15  ;;  %s175_s5 = sand.u32 (!%p150_p6), 1, %s1521_s12  }
   0xb   : > { %153 = sbr.rel (%p150_p6) target bundleno = 377 (0x179), region = 32  ;;  %v1406_v1 = vld [vmem:[%s1825_s1 + $0xc0] sm:$0xff] (!%p150_p6)   ;;  %1211 = vmatprep.subr.bf16.mxu0 (!%p150_p6), %v1405_v0  ;;  %v1410_v5 = vld [vmem:[%s1825_s1 + $0xc8] sm:$0xff] (!%p150_p6)   ;;  %v1414_v9 = vld [vmem:[%s1825_s1 + $0xd0] sm:$0xff] (!%p150_p6)  }
   0xc   : > { %v1407_v2 = vld [vmem:[%s1825_s1] sm:$0xff] (!%p150_p6)   ;;  %1263 = vmatprep.subr.bf16.mxu1 (!%p150_p6), %v1406_v1  ;;  %v1411_v6 = vld [vmem:[%s1825_s1 + $0x8] sm:$0xff] (!%p150_p6)   ;;  %v1415_v10 = vld [vmem:[%s1825_s1 + $0x10] sm:$0xff] (!%p150_p6)   ;;  %p184_p7 = scmp.lt.s32.totalorder (!%p150_p6), %s1658_s30, 20  ;;  %s1315_s6 = smul.u32 (!%p150_p6), 44, %s175_s5 }
   0xd   : > { %v1408_v3 = vld [vmem:[%s1825_s1 + $0x80] sm:$0xff] (!%p150_p6)   ;;  %1212 = vmatpush3.bf16.msra.mxu0 (!%p150_p6), %v1407_v2  ;;  %v1412_v7 = vld [vmem:[%s1825_s1 + $0x88] sm:$0xff] (!%p150_p6)   ;;  %v1416_v11 = vld [vmem:[%s1825_s1 + $0x90] sm:$0xff] (!%p150_p6)  }
   0xe   : > { %1264 = vmatpush3.bf16.msra.mxu1 (!%p150_p6), %v1408_v3  ;;  %1213 = vmatprep.subr.bf16.mxu0 (!%p150_p6), %v1409_v4  ;;  %v1417_v12 = vld [vmem:[%s1825_s1 + $0x58] sm:$0xff] (!%p150_p6)   ;;  %v1421_v16 = vld [vmem:[%s1825_s1 + $0x60] sm:$0xff] (!%p150_p6)   ;;  %v1425_v20 = vld [vmem:[%s1825_s1 + $0x68] sm:$0xff] (!%p150_p6)   ;;  %s1749_s12 = scalar_lea.vmem (!%p150_p6), [#allocation2], %s1315_s6  }
   0xf   : > { %1265 = vmatprep.subr.bf16.mxu1 (!%p150_p6), %v1410_v5  ;;  %v1418_v13 = vld [vmem:[%s1825_s1 + $0xd8] sm:$0xff] (!%p150_p6)   ;;  %v1422_v17 = vld [vmem:[%s1825_s1 + $0xe0] sm:$0xff] (!%p150_p6)   ;;  %v1426_v21 = vld [vmem:[%s1825_s1 + $0xe8] sm:$0xff] (!%p150_p6)  }
  0x10   : > { %v1419_v14 = vld [vmem:[%s1825_s1 + $0x18] sm:$0xff] (!%p150_p6)   ;;  %v1423_v18 = vld [vmem:[%s1825_s1 + $0x20] sm:$0xff] (!%p150_p6)   ;;  %v1427_v22 = vld [vmem:[%s1825_s1 + $0x28] sm:$0xff] (!%p150_p6)  }
  0x11   : > { %1214 = vmatpush3.bf16.msra.mxu0 (!%p150_p6), %v1411_v6  ;;  %v1420_v15 = vld [vmem:[%s1825_s1 + $0x98] sm:$0xff] (!%p150_p6)   ;;  %v1424_v19 = vld [vmem:[%s1825_s1 + $0xa0] sm:$0xff] (!%p150_p6)   ;;  %v1428_v23 = vld [vmem:[%s1825_s1 + $0xa8] sm:$0xff] (!%p150_p6)  }
  0x12   : > { %1266 = vmatpush3.bf16.msra.mxu1 %v1412_v7  ;;  %1215 = vmatprep.subr.bf16.mxu0 %v1413_v8  ;;  %s185_s26 = scalar_select %p184_p7, %s1658_s30, 20  ;;  %v1429_v24 = vld [vmem:[%s1825_s1 + $0x70] sm:$0xff]   ;;  %v1433_v28 = vld [vmem:[%s1825_s1 + $0x78] sm:$0xff]   ;;  %v1743_v60 = vld [vmem:[%s1826_s2] ss:$0 sm:$0xff] }
  0x13   : > { %1267 = vmatprep.subr.bf16.mxu1 %v1414_v9  ;;  %v1430_v25 = vld [vmem:[%s1825_s1 + $0xf0] sm:$0xff]   ;;  %v1434_v29 = vld [vmem:[%s1825_s1 + $0xf8] sm:$0xff]   ;;  %s835_s7 = ssub.s32 (%p1608_p4), 21, %s1658_s30  ;;  %s1181_s8 = smul.u32 (%p1608_p4), 44, %s1596_s15 }
  0x14   : > { %v1431_v26 = vld [vmem:[%s1825_s1 + $0x30] sm:$0xff]   ;;  %s1169_s9 = sshll.u32 %s185_s26, 4  ;;  %v1435_v30 = vld [vmem:[%s1825_s1 + $0x38] sm:$0xff]   ;;  %p836_p8 = scmp.lt.s32.totalorder (%p1608_p4), %s835_s7, 11 }
  0x15   : > { %1216 = vmatpush3.bf16.msra.mxu0 %v1415_v10  ;;  %v1432_v27 = vld [vmem:[%s1825_s1 + $0xb0] sm:$0xff]   ;;  %s1710_s24 = scalar_lea.vmem %s1824_s0, %s1169_s9  ;;  %v1436_v31 = vld [vmem:[%s1825_s1 + $0xb8] sm:$0xff]   ;;  %s1772_s11 = scalar_lea.vmem (%p1608_p4), %s1827_s3, %s1181_s8  }
  0x16   : > { %1268 = vmatpush3.bf16.msra.mxu1 %v1416_v11  ;;  %1217 = vmatprep.subr.bf16.mxu0 %v1417_v12  ;;  %v1437_v32 = vld [vmem:[%s1710_s24] ss:$16 sps:$4 sm:$0xff]   ;;  %v1439_v33 = vld [vmem:[%s1710_s24 + $0x4] ss:$16 sps:$4 sm:$0xff]   ;;  %v1440_v34 = vld [vmem:[%s1710_s24 + $0x8] ss:$16 sps:$4 sm:$0xff]  }
  0x17   : > { %1269 = vmatprep.subr.bf16.mxu1 %v1418_v13  ;;  %v1442_v35 = vld [vmem:[%s1710_s24 + $0xc] ss:$16 sps:$4 sm:$0xff]   ;;  %632 = vmatprep.mubr.bf16.mxu0 %v1439_v33  ;;  %v1443_v36 = vld [vmem:[%s1710_s24 + $0x24] ss:$16 sps:$4 sm:$0xff]   ;;  %v1447_v38 = vld [vmem:[%s1710_s24 + $0x20] ss:$16 sps:$4 sm:$0xff]  }
  0x18   : > { %712 = vmatprep.mubr.bf16.mxu1 %v1442_v35  ;;  %v1445_v37 = vld [vmem:[%s1710_s24 + $0x2c] ss:$16 sps:$4 sm:$0xff]   ;;  %v1448_v39 = vld [vmem:[%s1710_s24 + $0x28] ss:$16 sps:$4 sm:$0xff]   ;;  %v1449_v40 = vld [vmem:[%s1710_s24 + $0x44] ss:$16 sps:$4 sm:$0xff]  }
  0x19   : > { %1218 = vmatpush3.bf16.msra.mxu0 %v1419_v14  ;;  %v1451_v41 = vld [vmem:[%s1710_s24 + $0x4c] ss:$16 sps:$4 sm:$0xff]   ;;  %v1453_v42 = vld [vmem:[%s1710_s24 + $0x40] ss:$16 sps:$4 sm:$0xff]   ;;  %v1454_v43 = vld [vmem:[%s1710_s24 + $0x48] ss:$16 sps:$4 sm:$0xff]  }
  0x1a   : > { %1270 = vmatpush3.bf16.msra.mxu1 %v1420_v15  ;;  %1219 = vmatprep.subr.bf16.mxu0 %v1421_v16  ;;  %v1455_v44 = vld [vmem:[%s1710_s24 + $0x64] ss:$16 sps:$4 sm:$0xff]   ;;  %v1457_v45 = vld [vmem:[%s1710_s24 + $0x6c] ss:$16 sps:$4 sm:$0xff]   ;;  %v1459_v46 = vld [vmem:[%s1710_s24 + $0x60] ss:$16 sps:$4 sm:$0xff]  }
  0x1b   : > { %1271 = vmatprep.subr.bf16.mxu1 %v1422_v17  ;;  %v1460_v47 = vld [vmem:[%s1710_s24 + $0x68] ss:$16 sps:$4 sm:$0xff]   ;;  %v1461_v48 = vld [vmem:[%s1710_s24 + $0x84] ss:$16 sps:$4 sm:$0xff]   ;;  %v1463_v49 = vld [vmem:[%s1710_s24 + $0x8c] ss:$16 sps:$4 sm:$0xff]  }
  0x1c   : > { %v221_v50 = vld [vmem:[%s1710_s24 + $0xa0] sm:$0xff]  ;;  %v222_v51 = vld [vmem:[%s1710_s24 + $0xa8] sm:$0xff] }
  0x1d   : > { %1220 = vmatpush3.bf16.msra.mxu0 %v1423_v18  ;;  %v1465_v52 = vld [vmem:[%s1710_s24 + $0x80] ss:$16 sps:$4 sm:$0xff]   ;;  %v1466_v53 = vld [vmem:[%s1710_s24 + $0x88] ss:$16 sps:$4 sm:$0xff]   ;;  %v1111_v54 = vcombine.high %v221_v50, %v221_v50  ;;  %v1113_v55 = vcombine.high %v222_v51, %v222_v51  ;;  %v1110_v56 = vcombine.low %v221_v50, %v221_v50  ;;  %v1112_v57 = vcombine.low %v222_v51, %v222_v51 }
  0x1e   : > { %1272 = vmatpush3.bf16.msra.mxu1 %v1424_v19  ;;  %1221 = vmatprep.subr.bf16.mxu0 %v1425_v20 }
  0x1f   : > { %1273 = vmatprep.subr.bf16.mxu1 %v1426_v21 }
  0x21   : > { %1222 = vmatpush3.bf16.msra.mxu0 %v1427_v22 }
  0x22   : > { %1274 = vmatpush3.bf16.msra.mxu1 %v1428_v23  ;;  %1223 = vmatprep.subr.bf16.mxu0 %v1429_v24 }
  0x23   : > { %1275 = vmatprep.subr.bf16.mxu1 %v1430_v25 }
  0x25   : > { %1224 = vmatpush3.bf16.msra.mxu0 %v1431_v26 }
  0x26   : > { %1276 = vmatpush3.bf16.msra.mxu1 %v1432_v27  ;;  %1225 = vmatprep.subr.bf16.mxu0 %v1433_v28 }
  0x27   : > { %1277 = vmatprep.subr.bf16.mxu1 %v1434_v29 }
  0x29   : > { %1226 = vmatpush3.bf16.msra.mxu0 %v1435_v30 }
  0x2a   : > { %1278 = vmatpush3.bf16.msra.mxu1 %v1436_v31 }
  0x2c   : > { %633 = vmatmul.mubr.bf16.vlgmr.msra.gmra.mrb[0].mxu0 %v1437_v32 }
  0x2d   : > { %713 = vmatmul.mubr.bf16.vlgmr.msra.gmra.mrb[0].mxu1 %v1440_v34  ;;  %640 = vmatprep.mubr.bf16.mxu0 %v1443_v36 }
  0x2e   : > { %720 = vmatprep.mubr.bf16.mxu1 %v1445_v37 }
  0x34   : > { %641 = vmatmul.mubr.bf16.gmra.mrb[4].mxu0 %v1447_v38 }
  0x35   : > { %721 = vmatmul.mubr.bf16.gmra.mrb[4].mxu1 %v1448_v39  ;;  %648 = vmatprep.mubr.bf16.mxu0 %v1449_v40 }
  0x36   : > { %728 = vmatprep.mubr.bf16.mxu1 %v1451_v41 }
  0x3c   : > { %649 = vmatmul.mubr.bf16.gmra.mrb[8].mxu0 %v1453_v42 }
  0x3d   : > { %729 = vmatmul.mubr.bf16.gmra.mrb[8].mxu1 %v1454_v43  ;;  %656 = vmatprep.mubr.bf16.mxu0 %v1455_v44 }
  0x3e   : > { %736 = vmatprep.mubr.bf16.mxu1 %v1457_v45 }
  0x44   : > { %657 = vmatmul.mubr.bf16.gmra.mrb[12].mxu0 %v1459_v46 }
  0x45   : > { %737 = vmatmul.mubr.bf16.gmra.mrb[12].mxu1 %v1460_v47  ;;  %664 = vmatprep.mubr.bf16.mxu0 %v1461_v48 }
  0x46   : > { %744 = vmatprep.mubr.bf16.mxu1 %v1463_v49 }
  0x4c   : > { %665 = vmatmul.mubr.bf16.gmra.mrb[16].mxu0 %v1465_v52 }
  0x4d   : > { %745 = vmatmul.mubr.bf16.gmra.mrb[16].mxu1 %v1466_v53  ;;  %672 = vmatprep.mubr.bf16.mxu0 %v1111_v54 }
  0x4e   : > { %752 = vmatprep.mubr.bf16.mxu1 %v1113_v55 }
  0x54   : > { %673 = vmatmul.mubr.bf16.gmra.mrb[20].mxu0 %v1110_v56 }
  0x55   : > { %753 = vmatmul.mubr.bf16.gmra.mrb[20].mxu1 %v1112_v57 }
  0xff   : > { %v1227_v58 = vpop.f32.mrb[0].mxu0 }
 0x100   : > { %v1279_v59 = vpop.f32.mrb[0].mxu1  ;;  %v1228_v61 = vpop.f32.mrb[1].mxu0 }
 0x101   : > { %v1229_v62 = vadd.f32 %v1228_v61, %v1227_v58  ;;  %v1280_v63 = vpop.f32.mrb[1].mxu1  ;;  %v1230_v0 = vpop.f32.mrb[2].mxu0 }
 0x102   : > { %v1281_v1 = vadd.f32 %v1280_v63, %v1279_v59  ;;  %v1282_v2 = vpop.f32.mrb[2].mxu1  ;;  %v1231_v3 = vpop.f32.mrb[3].mxu0 }
 0x103   : > { %v635_v4 = vadd.f32 %v1229_v62, %v1743_v60  ;;  %v1232_v5 = vadd.f32 %v1231_v3, %v1230_v0  ;;  %v1283_v6 = vpop.f32.mrb[3].mxu1 }
 0x104   : > { %v1284_v7 = vadd.f32 %v1283_v6, %v1282_v2 }
 0x105   : > { %v715_v8 = vadd.f32 %v1281_v1, %v635_v4  ;;  %v638_v9 = vadd.f32 %v1232_v5, %v1743_v60 }
 0x107   : > { %v718_v10 = vadd.f32 %v1284_v7, %v638_v9  ;;  %v1233_v11 = vpop.f32.mrb[4].mxu0  ;;  %v760_v14 = vmax.f32 %v715_v8, 0.0 }
 0x108   : > { %v1285_v12 = vpop.f32.mrb[4].mxu1  ;;  %v1234_v13 = vpop.f32.mrb[5].mxu0 }
 0x109   : > { %v761_v15 = vmax.f32 %v718_v10, 0.0  ;;  %v1235_v16 = vadd.f32 %v1234_v13, %v1233_v11  ;;  %v1286_v17 = vpop.f32.mrb[5].mxu1  ;;  %v1236_v18 = vpop.f32.mrb[6].mxu0 }
 0x10a   : > { %v1287_v19 = vadd.f32 %v1286_v17, %v1285_v12  ;;  %v1288_v20 = vpop.f32.mrb[6].mxu1  ;;  %v1237_v21 = vpop.f32.mrb[7].mxu0 }
 0x10b   : > { %v1185_v22 = vpack.c.bf16 %v761_v15, %v760_v14  ;;  %v643_v23 = vadd.f32 %v1235_v16, %v1743_v60  ;;  %v1238_v24 = vadd.f32 %v1237_v21, %v1236_v18  ;;  %v1289_v25 = vpop.f32.mrb[7].mxu1 }
 0x10c   : > { %v1290_v26 = vadd.f32 %v1289_v25, %v1288_v20 }
 0x10d   : > { %1186 = vst [vmem:[%s1749_s12] sm:$0xff] %v1185_v22   ;;  %v723_v27 = vadd.f32 %v1287_v19, %v643_v23  ;;  %v646_v28 = vadd.f32 %v1238_v24, %v1743_v60 }
 0x10f   : > { %v726_v29 = vadd.f32 %v1290_v26, %v646_v28  ;;  %v1239_v30 = vpop.f32.mrb[8].mxu0  ;;  %v762_v33 = vmax.f32 %v723_v27, 0.0 }
 0x110   : > { %v1291_v31 = vpop.f32.mrb[8].mxu1  ;;  %v1240_v32 = vpop.f32.mrb[9].mxu0 }
 0x111   : > { %v763_v34 = vmax.f32 %v726_v29, 0.0  ;;  %v1241_v35 = vadd.f32 %v1240_v32, %v1239_v30  ;;  %v1292_v36 = vpop.f32.mrb[9].mxu1  ;;  %v1242_v37 = vpop.f32.mrb[10].mxu0 }
 0x112   : > { %v1293_v38 = vadd.f32 %v1292_v36, %v1291_v31  ;;  %v1294_v39 = vpop.f32.mrb[10].mxu1  ;;  %v1243_v40 = vpop.f32.mrb[11].mxu0 }
 0x113   : > { %v1190_v41 = vpack.c.bf16 %v763_v34, %v762_v33  ;;  %v651_v42 = vadd.f32 %v1241_v35, %v1743_v60  ;;  %v1244_v43 = vadd.f32 %v1243_v40, %v1242_v37  ;;  %v1295_v44 = vpop.f32.mrb[11].mxu1 }
 0x114   : > { %v1296_v45 = vadd.f32 %v1295_v44, %v1294_v39 }
 0x115   : > { %1207 = vst [vmem:[%s1749_s12 + $0x8] sm:$0xff] %v1190_v41   ;;  %v731_v46 = vadd.f32 %v1293_v38, %v651_v42  ;;  %v654_v47 = vadd.f32 %v1244_v43, %v1743_v60 }
 0x117   : > { %v734_v48 = vadd.f32 %v1296_v45, %v654_v47  ;;  %v1245_v49 = vpop.f32.mrb[12].mxu0  ;;  %v764_v52 = vmax.f32 %v731_v46, 0.0 }
 0x118   : > { %v1297_v50 = vpop.f32.mrb[12].mxu1  ;;  %v1246_v51 = vpop.f32.mrb[13].mxu0 }
 0x119   : > { %v765_v53 = vmax.f32 %v734_v48, 0.0  ;;  %v1247_v54 = vadd.f32 %v1246_v51, %v1245_v49  ;;  %v1298_v55 = vpop.f32.mrb[13].mxu1  ;;  %v1248_v56 = vpop.f32.mrb[14].mxu0 }
 0x11a   : > { %v1299_v57 = vadd.f32 %v1298_v55, %v1297_v50  ;;  %v1300_v58 = vpop.f32.mrb[14].mxu1  ;;  %v1249_v59 = vpop.f32.mrb[15].mxu0 }
 0x11b   : > { %v1195_v61 = vpack.c.bf16 %v765_v53, %v764_v52  ;;  %v659_v62 = vadd.f32 %v1247_v54, %v1743_v60  ;;  %v1250_v63 = vadd.f32 %v1249_v59, %v1248_v56  ;;  %v1301_v0 = vpop.f32.mrb[15].mxu1 }
 0x11c   : > { %v1302_v1 = vadd.f32 %v1301_v0, %v1300_v58 }
 0x11d   : > { %1208 = vst [vmem:[%s1749_s12 + $0x10] sm:$0xff] %v1195_v61   ;;  %v739_v2 = vadd.f32 %v1299_v57, %v659_v62  ;;  %v662_v3 = vadd.f32 %v1250_v63, %v1743_v60 }
 0x11f   : > { %v742_v4 = vadd.f32 %v1302_v1, %v662_v3  ;;  %v1251_v5 = vpop.f32.mrb[16].mxu0  ;;  %v766_v8 = vmax.f32 %v739_v2, 0.0 }
 0x120   : > { %v1303_v6 = vpop.f32.mrb[16].mxu1  ;;  %v1252_v7 = vpop.f32.mrb[17].mxu0 }
 0x121   : > { %v767_v9 = vmax.f32 %v742_v4, 0.0  ;;  %v1253_v10 = vadd.f32 %v1252_v7, %v1251_v5  ;;  %v1304_v11 = vpop.f32.mrb[17].mxu1  ;;  %v1254_v12 = vpop.f32.mrb[18].mxu0 }
 0x122   : > { %v1305_v13 = vadd.f32 %v1304_v11, %v1303_v6  ;;  %v1306_v14 = vpop.f32.mrb[18].mxu1  ;;  %v1255_v15 = vpop.f32.mrb[19].mxu0 }
 0x123   : > { %v1200_v16 = vpack.c.bf16 %v767_v9, %v766_v8  ;;  %v667_v17 = vadd.f32 %v1253_v10, %v1743_v60  ;;  %v1256_v18 = vadd.f32 %v1255_v15, %v1254_v12  ;;  %v1307_v19 = vpop.f32.mrb[19].mxu1 }
 0x124   : > { %v1308_v20 = vadd.f32 %v1307_v19, %v1306_v14 }
 0x125   : > { %1209 = vst [vmem:[%s1749_s12 + $0x18] sm:$0xff] %v1200_v16   ;;  %v747_v21 = vadd.f32 %v1305_v13, %v667_v17  ;;  %v670_v22 = vadd.f32 %v1256_v18, %v1743_v60 }
 0x127   : > { %v750_v23 = vadd.f32 %v1308_v20, %v670_v22  ;;  %v1257_v24 = vpop.f32.mrb[20].mxu0  ;;  %v768_v27 = vmax.f32 %v747_v21, 0.0 }
 0x128   : > { %v1309_v25 = vpop.f32.mrb[20].mxu1  ;;  %v1258_v26 = vpop.f32.mrb[21].mxu0 }
 0x129   : > { %v769_v28 = vmax.f32 %v750_v23, 0.0  ;;  %v1259_v29 = vadd.f32 %v1258_v26, %v1257_v24  ;;  %v1310_v30 = vpop.f32.mrb[21].mxu1  ;;  %v1260_v31 = vpop.f32.mrb[22].mxu0 }
 0x12a   : > { %v1311_v32 = vadd.f32 %v1310_v30, %v1309_v25  ;;  %v1312_v33 = vpop.f32.mrb[22].mxu1  ;;  %v1261_v34 = vpop.f32.mrb[23].mxu0 }
 0x12b   : > { %v1205_v35 = vpack.c.bf16 %v769_v28, %v768_v27  ;;  %v675_v36 = vadd.f32 %v1259_v29, %v1743_v60  ;;  %v1313_v37 = vpop.f32.mrb[23].mxu1 }
 0x12d   : > { %1210 = vst [vmem:[%s1749_s12 + $0x20] sm:$0xff] %v1205_v35   ;;  %v755_v38 = vadd.f32 %v1311_v32, %v675_v36  ;;  %833 = sbr.rel (!%p1608_p4) target bundleno = 377 (0x179), region = 36 }
 0x12f   : > { %v770_v39 = vmax.f32 %v755_v38, 0.0 }
 0x131   : > { %v1180_v40 = vpack.c.bf16 %v770_v39, %v770_v39 }
 0x133   : > { %826 = vst [vmem:[%s1749_s12 + $0x28] sm:$0xf] %v1180_v40 }
 0x134   : > { %s1836_s7 = smov (!%p836_p8, %s835_s7), 11 }
 0x135   : > { %s1157_s14 = sshll.u32 %s1836_s7, 6 }
 0x136   : > { %p1160_p9 = scmp.eq.s32.totalorder %s1157_s14, 0 }
 0x137   : > { %1471 = sdivrem.u32 (!%p1160_p9), %s1836_s7, 11 }
 0x138   : > { %844 = sbr.rel (%p1160_p9) target bundleno = 377 (0x179), region = 40 }
 0x140   : > { %s1778_s20 = spop.drf %1471 }
 0x141   : > { %p1161_p10 = scmp.le.s32.totalorder %s1778_s20, 0 }
 0x142   : > { %s1829_s15 = smov (!%p1161_p10), %s1772_s11  ;;  %s1830_s30 = smov (!%p1161_p10), %s1749_s12 }
 0x143   : > { %1039 = sbr.rel (%p1161_p10) target bundleno = 348 (0x15c), region = 112  ;;  %s1787_s17 = smov (!%p1161_p10), 0  }
 0x144   : > { %s1789_s18 = smov (!%p1161_p10), 0  }
 0x14a LB: >> { %v861_v60 = vld [vmem:[%s1537_s30] sm:$0xf]  ;;  %v863_v41 = vld [vmem:[%s1537_s30 + $0x4] sm:$0xf]  ;;  %v865_v42 = vld [vmem:[%s1537_s30 + $0x8] sm:$0xf]  ;;  %s1545_s18 = sphi %s1789_s18, %s855_s18   ;;  %s1541_s17 = sphi %s1787_s17, %s1831_s17   ;;  %s1537_s30 = sphi %s1830_s30, %s888_s30   ;;  %s1533_s15 = sphi %s1829_s15, %s889_s15  }
 0x14b   : >> { %862 = vst [vmem:[%s1533_s15] sm:$0xf] %v861_v60  ;;  %864 = vst [vmem:[%s1533_s15 + $0x4] sm:$0xf] %v863_v41  ;;  %v867_v43 = vld [vmem:[%s1537_s30 + $0xc] sm:$0xf]  ;;  %s883_s21 = sadd.s32 1, %s1541_s17 }
 0x14c   : >> { %866 = vst [vmem:[%s1533_s15 + $0x8] sm:$0xf] %v865_v42  ;;  %v869_v44 = vld [vmem:[%s1537_s30 + $0x10] sm:$0xf]  ;;  %v871_v45 = vld [vmem:[%s1537_s30 + $0x14] sm:$0xf]  ;;  %p884_p11 = scmp.ge.s32.totalorder %s883_s21, %s1778_s20 }
 0x14d   : >> { %868 = vst [vmem:[%s1533_s15 + $0xc] sm:$0xf] %v867_v43  ;;  %870 = vst [vmem:[%s1533_s15 + $0x10] sm:$0xf] %v869_v44  ;;  %v873_v46 = vld [vmem:[%s1537_s30 + $0x18] sm:$0xf] }
 0x14e   : >> { %872 = vst [vmem:[%s1533_s15 + $0x14] sm:$0xf] %v871_v45  ;;  %v875_v47 = vld [vmem:[%s1537_s30 + $0x1c] sm:$0xf]  ;;  %v877_v48 = vld [vmem:[%s1537_s30 + $0x20] sm:$0xf] }
 0x14f   : >> { %874 = vst [vmem:[%s1533_s15 + $0x18] sm:$0xf] %v873_v46  ;;  %876 = vst [vmem:[%s1533_s15 + $0x1c] sm:$0xf] %v875_v47  ;;  %v879_v49 = vld [vmem:[%s1537_s30 + $0x24] sm:$0xf] }
 0x150   : >> { %878 = vst [vmem:[%s1533_s15 + $0x20] sm:$0xf] %v877_v48  ;;  %v881_v50 = vld [vmem:[%s1537_s30 + $0x28] sm:$0xf]  ;;  %880 = vst [vmem:[%s1533_s15 + $0x24] sm:$0xf] %v879_v49 }
 0x151   : >> { %882 = vst [vmem:[%s1533_s15 + $0x28] sm:$0xf] %v881_v50  ;;  %s1838_s21 = smov (%p884_p11, %s883_s21), 0  ;;  %s855_s18 = sadd.s32 1, %s1545_s18  }
 0x152   : >> { %s886_s22 = smul.u32 44, %s1838_s21  ;;  %p854_p12 = scmp.ge.s32.totalorder %s855_s18, %s1778_s20 }
 0x153   : >> { %s1831_s17 = smov %s1838_s21 }
 0x154   : >> { %s888_s30 = scalar_lea.vmem %s1749_s12, %s886_s22 [#allocation2]   ;;  %s889_s15 = scalar_lea.vmem %s1772_s11, %s886_s22  }
 0x155   : > { %857 = sbr.rel (!%p854_p12) target bundleno = 330 (0x14a), region = 118 }
 0x15c PF: > { %1473 = sdivrem.u32 %s1836_s7, 11 }
 0x15d   : > { %s1162_s23 = smul.u32 44, %s1778_s20 }
 0x15f   : > { %s894_s24 = scalar_lea.vmem %s1749_s12, %s1162_s23 [#allocation2]   ;;  %s896_s25 = scalar_lea.vmem %s1772_s11, %s1162_s23  }
 0x165   : > { %s1474_s26 = spop.drf %1473 }
 0x166   : > { %p1164_p13 = scmp.le.s32.totalorder %s1474_s26, 0 }
 0x167   : > { %s1547_s27 = smov (!%p1164_p13), %s896_s25   ;;  %s1551_s28 = smov (!%p1164_p13), %s894_s24  }
 0x168   : > { %1053 = sbr.rel (%p1164_p13) target bundleno = 377 (0x179), region = 123  ;;  %s1555_s29 = smov (!%p1164_p13), 0  }
 0x169   : > { %s1559_s4 = smov (!%p1164_p13), 0  }
 0x16f LB: >> { %v906_v51 = vld [vmem:[%s1553_s28] sm:$0xf]  ;;  %s908_s5 = sadd.s32 1, %s1557_s29  ;;  %s900_s4 = sadd.s32 1, %s1561_s4   ;;  %s1561_s4 = sphi %s1559_s4, %s900_s4   ;;  %s1557_s29 = sphi %s1555_s29, %s1556_s29   ;;  %s1553_s28 = sphi %s1551_s28, %s913_s28   ;;  %s1549_s27 = sphi %s1547_s27, %s914_s27  }
 0x170   : >> { %907 = vst [vmem:[%s1549_s27] sm:$0xf] %v906_v51  ;;  %p909_p0 = scmp.ge.s32.totalorder %s908_s5, %s1474_s26  ;;  %p899_p1 = scmp.ge.s32.totalorder %s900_s4, %s1474_s26 }
 0x172   : >> { %s1840_s5 = smov (%p909_p0, %s908_s5), 0  ;;  %902 = sbr.rel (!%p899_p1) target bundleno = 367 (0x16f), region = 129 }
 0x173   : >> { %s1165_s6 = sshll.u32 %s1840_s5, 2  ;;  %s1556_s29 = smov %s1840_s5  }
 0x174   : >> { %s913_s28 = scalar_lea.vmem %s894_s24, %s1165_s6 [#allocation2]   ;;  %s914_s27 = scalar_lea.vmem %s896_s25, %s1165_s6  }
 0x179 PF: > { %p10_p2 = scmp.ge.s32.totalorder %s1598_s16, 4   ;;  %s1832_s12 = smov %s1525_s13 }
 0x17a   : > { %s1833_s13 = smov %s1606_s19  ;;  %s1834_s14 = smov %s1598_s16 }
 0x17b   :  { %12 = sbr.rel (!%p10_p2) target bundleno = 2 (0x2), region = 140 }

// kernel: policy_net_forward.5
= control target key start
LH: loop header
LB: loop body
LE: loop exit
PB: predicated region body
PF: predicated region fallthrough
CT: control target
= control target key end

     0   :  { %s1631_s12 = smov 0   ;;  %s1633_s13 = smov 0   ;;  %s1874_s0 = inlined_call_operand.vmem [shape: bf16[98,640], index: 0, kind: input, shape index: {}]   ;;  %s1875_s1 = inlined_call_operand.vmem [shape: bf16[640,128], index: 1, kind: input, shape index: {}]   ;;  %s1876_s2 = inlined_call_operand.vmem [shape: f32[1,128], index: 2, kind: input, shape index: {}]   ;;  %s1877_s3 = inlined_call_operand.vmem [shape: bf16[98,128], index: 3, kind: output, shape index: {}]  }
   0x1   :  { %s1635_s14 = smov 0  }
   0x2 LB: > { %s1644_s15 = sadd.s32 4294967295, %s1577_s14   ;;  %s1646_s16 = sadd.s32 1, %s1577_s14   ;;  %s1577_s14 = sphi %s1635_s14, %s1884_s14   ;;  %s1573_s13 = sphi %s1633_s13, %s1883_s13   ;;  %s1569_s12 = sphi %s1631_s12, %s1882_s12  }
   0x3   : > { %s85_s17 = ssub.s32 %s1577_s14, %s1646_s16  ;;  %s88_s18 = sadd.s32 1, %s1573_s13 }
   0x4   : > { %p86_p0 = scmp.eq.s32.totalorder %s85_s17, 0  ;;  %p98_p1 = scmp.ne.s32.totalorder %s1573_s13, %s1569_s12 }
   0x5   : > { %p99_p2 = scmp.eq.s32.totalorder %s1644_s15, 1  ;;  %p1123_p3 = scmp.ge.s32.totalorder %s1577_s14, 1 }
   0x6   : > { %s1654_s19 = scalar_select %p86_p0, %s1573_s13, %s88_s18  }
   0x7   : > { %p1656_p4 = por %p99_p2, %p98_p1  ;;  %p149_p5 = scmp.lt.s32.totalorder %s1577_s14, 3 }
   0x9   : > { %p150_p6 = pnand %p1123_p3, %p149_p5 }
   0xa   : > { %v1453_v0 = vld [vmem:[%s1875_s1 + $0x40] sm:$0xff] (!%p150_p6)   ;;  %v1457_v4 = vld [vmem:[%s1875_s1 + $0x48] sm:$0xff] (!%p150_p6)   ;;  %v1461_v8 = vld [vmem:[%s1875_s1 + $0x50] sm:$0xff] (!%p150_p6)   ;;  %s1703_s28 = smul.u32 (!%p150_p6), 7, %s1644_s15 }
   0xb   : > { %153 = sbr.rel (%p150_p6) target bundleno = 366 (0x16e), region = 32  ;;  %v1454_v1 = vld [vmem:[%s1875_s1 + $0xc0] sm:$0xff] (!%p150_p6)   ;;  %1230 = vmatprep.subr.bf16.mxu0 (!%p150_p6), %v1453_v0  ;;  %v1458_v5 = vld [vmem:[%s1875_s1 + $0xc8] sm:$0xff] (!%p150_p6)   ;;  %v1462_v9 = vld [vmem:[%s1875_s1 + $0xd0] sm:$0xff] (!%p150_p6)  }
   0xc   : > { %v1455_v2 = vld [vmem:[%s1875_s1] sm:$0xff] (!%p150_p6)   ;;  %1270 = vmatprep.subr.bf16.mxu1 (!%p150_p6), %v1454_v1  ;;  %v1459_v6 = vld [vmem:[%s1875_s1 + $0x8] sm:$0xff] (!%p150_p6)   ;;  %v1463_v10 = vld [vmem:[%s1875_s1 + $0x10] sm:$0xff] (!%p150_p6)   ;;  %p184_p7 = scmp.lt.s32.totalorder (!%p150_p6), %s1703_s28, 12 }
   0xd   : > { %v1456_v3 = vld [vmem:[%s1875_s1 + $0x80] sm:$0xff] (!%p150_p6)   ;;  %1231 = vmatpush3.bf16.msra.mxu0 (!%p150_p6), %v1455_v2  ;;  %v1460_v7 = vld [vmem:[%s1875_s1 + $0x88] sm:$0xff] (!%p150_p6)   ;;  %v1464_v11 = vld [vmem:[%s1875_s1 + $0x90] sm:$0xff] (!%p150_p6)  }
   0xe   : > { %1271 = vmatpush3.bf16.msra.mxu1 (!%p150_p6), %v1456_v3  ;;  %1232 = vmatprep.subr.bf16.mxu0 (!%p150_p6), %v1457_v4  ;;  %v1465_v12 = vld [vmem:[%s1875_s1 + $0x58] sm:$0xff] (!%p150_p6)   ;;  %v1469_v16 = vld [vmem:[%s1875_s1 + $0x60] sm:$0xff] (!%p150_p6)   ;;  %v1473_v20 = vld [vmem:[%s1875_s1 + $0x68] sm:$0xff] (!%p150_p6)  }
   0xf   : > { %1272 = vmatprep.subr.bf16.mxu1 (!%p150_p6), %v1458_v5  ;;  %v1466_v13 = vld [vmem:[%s1875_s1 + $0xd8] sm:$0xff] (!%p150_p6)   ;;  %v1470_v17 = vld [vmem:[%s1875_s1 + $0xe0] sm:$0xff] (!%p150_p6)   ;;  %v1474_v21 = vld [vmem:[%s1875_s1 + $0xe8] sm:$0xff] (!%p150_p6)  }
  0x10   : > { %v1467_v14 = vld [vmem:[%s1875_s1 + $0x18] sm:$0xff] (!%p150_p6)   ;;  %v1471_v18 = vld [vmem:[%s1875_s1 + $0x20] sm:$0xff] (!%p150_p6)   ;;  %v1475_v22 = vld [vmem:[%s1875_s1 + $0x28] sm:$0xff] (!%p150_p6)  }
  0x11   : > { %1233 = vmatpush3.bf16.msra.mxu0 (!%p150_p6), %v1459_v6  ;;  %v1468_v15 = vld [vmem:[%s1875_s1 + $0x98] sm:$0xff] (!%p150_p6)   ;;  %v1472_v19 = vld [vmem:[%s1875_s1 + $0xa0] sm:$0xff] (!%p150_p6)   ;;  %v1476_v23 = vld [vmem:[%s1875_s1 + $0xa8] sm:$0xff] (!%p150_p6)  }
  0x12   : > { %1273 = vmatpush3.bf16.msra.mxu1 %v1460_v7  ;;  %1234 = vmatprep.subr.bf16.mxu0 %v1461_v8  ;;  %s185_s24 = scalar_select %p184_p7, %s1703_s28, 12  ;;  %v1477_v24 = vld [vmem:[%s1875_s1 + $0x70] sm:$0xff]   ;;  %v1481_v28 = vld [vmem:[%s1875_s1 + $0x78] sm:$0xff]   ;;  %v1491_v36 = vld [vmem:[%s1875_s1 + $0x100] sm:$0xff]  }
  0x13   : > { %1274 = vmatprep.subr.bf16.mxu1 %v1462_v9  ;;  %v1478_v25 = vld [vmem:[%s1875_s1 + $0xf0] sm:$0xff]   ;;  %v1482_v29 = vld [vmem:[%s1875_s1 + $0xf8] sm:$0xff]   ;;  %v1492_v37 = vld [vmem:[%s1875_s1 + $0x108] sm:$0xff]   ;;  %s888_s30 = ssub.s32 (%p1656_p4), 13, %s1703_s28  ;;  %s1212_s4 = smul.u32 (%p1656_p4), 28, %s1644_s15 }
  0x14   : > { %s1363_s7 = smul.u32 20, %s185_s24  ;;  %v1479_v26 = vld [vmem:[%s1875_s1 + $0x30] sm:$0xff]   ;;  %v1483_v30 = vld [vmem:[%s1875_s1 + $0x38] sm:$0xff]   ;;  %v1507_v46 = vld [vmem:[%s1875_s1 + $0x120] sm:$0xff]   ;;  %p889_p8 = scmp.lt.s32.totalorder (%p1656_p4), %s888_s30, 7 }
  0x15   : > { %1235 = vmatpush3.bf16.msra.mxu0 %v1463_v10  ;;  %v1480_v27 = vld [vmem:[%s1875_s1 + $0xb0] sm:$0xff]   ;;  %v1484_v31 = vld [vmem:[%s1875_s1 + $0xb8] sm:$0xff]   ;;  %v1508_v53 = vld [vmem:[%s1875_s1 + $0x128] sm:$0xff]  }
  0x16   : > { %1275 = vmatpush3.bf16.msra.mxu1 %v1464_v11  ;;  %1236 = vmatprep.subr.bf16.mxu0 %v1465_v12  ;;  %s1758_s24 = scalar_lea.vmem %s1874_s0, %s1363_s7  ;;  %v1499_v41 = vld [vmem:[%s1875_s1 + $0x110] sm:$0xff]   ;;  %v1500_v44 = vld [vmem:[%s1875_s1 + $0x118] sm:$0xff]   ;;  %v1125_v0 = vld [vmem:[%s1876_s2] ss:$0 sm:$0xff]  ;;  %s1825_s7 = scalar_lea.vmem (%p1656_p4), %s1877_s3, %s1212_s4  }
  0x17   : > { %1276 = vmatprep.subr.bf16.mxu1 %v1466_v13  ;;  %v1485_v32 = vld [vmem:[%s1758_s24] ss:$20 sps:$4 sm:$0xff]   ;;  %v1487_v33 = vld [vmem:[%s1758_s24 + $0x4] ss:$20 sps:$4 sm:$0xff]   ;;  %v1488_v34 = vld [vmem:[%s1758_s24 + $0x8] ss:$20 sps:$4 sm:$0xff]  }
  0x18   : > { %v1490_v35 = vld [vmem:[%s1758_s24 + $0xc] ss:$20 sps:$4 sm:$0xff]   ;;  %677 = vmatprep.mubr.bf16.mxu0 %v1487_v33  ;;  %v1495_v39 = vld [vmem:[%s1758_s24 + $0x34] ss:$20 sps:$4 sm:$0xff]   ;;  %v1498_v42 = vld [vmem:[%s1758_s24 + $0x30] ss:$20 sps:$4 sm:$0xff]  }
  0x19   : > { %1237 = vmatpush3.bf16.msra.mxu0 %v1467_v14  ;;  %741 = vmatprep.mubr.bf16.mxu1 %v1490_v35  ;;  %v1493_v38 = vld [vmem:[%s1758_s24 + $0x2c] ss:$20 sps:$4 sm:$0xff]   ;;  %v1497_v40 = vld [vmem:[%s1758_s24 + $0x28] ss:$20 sps:$4 sm:$0xff]   ;;  %v1505_v49 = vld [vmem:[%s1758_s24 + $0x50] ss:$20 sps:$4 sm:$0xff]  }
  0x1a   : > { %1277 = vmatpush3.bf16.msra.mxu1 %v1468_v15  ;;  %1238 = vmatprep.subr.bf16.mxu0 %v1469_v16  ;;  %v1501_v43 = vld [vmem:[%s1758_s24 + $0x54] ss:$20 sps:$4 sm:$0xff]   ;;  %v1503_v45 = vld [vmem:[%s1758_s24 + $0x5c] ss:$20 sps:$4 sm:$0xff]   ;;  %v220_v48 = vld [vmem:[%s1758_s24 + $0x80] sm:$0xff] }
  0x1b   : > { %1278 = vmatprep.subr.bf16.mxu1 %v1470_v17  ;;  %v219_v47 = vld [vmem:[%s1758_s24 + $0x78] sm:$0xff]  ;;  %v1144_v52 = vcombine.high %v220_v48, %v220_v48  ;;  %v1513_v54 = vld [vmem:[%s1875_s1 + $0x130] sm:$0xff]   ;;  %v1143_v56 = vcombine.low %v220_v48, %v220_v48  ;;  %v1518_v61 = vld [vmem:[%s1758_s24 + $0x88] ss:$0 sps:$4 sm:$0xff]  }
  0x1c   : > { %v1506_v50 = vld [vmem:[%s1758_s24 + $0x58] ss:$20 sps:$4 sm:$0xff]   ;;  %v1142_v51 = vcombine.high %v219_v47, %v219_v47  ;;  %v1141_v55 = vcombine.low %v219_v47, %v219_v47  ;;  %v1515_v57 = vld [vmem:[%s1758_s24 + $0x10] ss:$20 sps:$4 sm:$0xff]   ;;  %v1516_v58 = vld [vmem:[%s1758_s24 + $0x60] ss:$20 sps:$4 sm:$0xff]  }
  0x1d   : > { %1239 = vmatpush3.bf16.msra.mxu0 %v1471_v18  ;;  %v1514_v59 = vld [vmem:[%s1875_s1 + $0x138] sm:$0xff]  }
  0x1e   : > { %1279 = vmatpush3.bf16.msra.mxu1 %v1472_v19  ;;  %1240 = vmatprep.subr.bf16.mxu0 %v1473_v20  ;;  %v1517_v60 = vld [vmem:[%s1758_s24 + $0x38] ss:$20 sps:$4 sm:$0xff]   ;;  %s175_s24 = sand.u32 1, %s1569_s12  }
  0x1f   : > { %1280 = vmatprep.subr.bf16.mxu1 %v1474_v21  ;;  %s1362_s29 = smul.u32 28, %s175_s24 }
  0x21   : > { %1241 = vmatpush3.bf16.msra.mxu0 %v1475_v22  ;;  %s1812_s12 = scalar_lea.vmem [#allocation2], %s1362_s29  }
  0x22   : > { %1281 = vmatpush3.bf16.msra.mxu1 %v1476_v23  ;;  %1242 = vmatprep.subr.bf16.mxu0 %v1477_v24 }
  0x23   : > { %1282 = vmatprep.subr.bf16.mxu1 %v1478_v25 }
  0x25   : > { %1243 = vmatpush3.bf16.msra.mxu0 %v1479_v26 }
  0x26   : > { %1283 = vmatpush3.bf16.msra.mxu1 %v1480_v27  ;;  %1244 = vmatprep.subr.bf16.mxu0 %v1481_v28 }
  0x27   : > { %1284 = vmatprep.subr.bf16.mxu1 %v1482_v29 }
  0x29   : > { %1245 = vmatpush3.bf16.msra.mxu0 %v1483_v30 }
  0x2a   : > { %1285 = vmatpush3.bf16.msra.mxu1 %v1484_v31  ;;  %1322 = vmatprep.subr.bf16.mxu0 %v1491_v36 }
  0x2b   : > { %1346 = vmatprep.subr.bf16.mxu1 %v1491_v36 }
  0x2c   : > { %678 = vmatmul.mubr.bf16.vlgmr.msra.gmra.mrb[0].mxu0 %v1485_v32 }
  0x2d   : > { %742 = vmatmul.mubr.bf16.vlgmr.msra.gmra.mrb[0].mxu1 %v1488_v34  ;;  %1323 = vmatpush3.bf16.msra.mxu0 %v1491_v36 }
  0x2e   : > { %1354 = vmatpush3.bf16.msra.mxu1 %v1491_v36  ;;  %1324 = vmatprep.subr.bf16.mxu0 %v1492_v37 }
  0x2f   : > { %1347 = vmatprep.subr.bf16.mxu1 %v1492_v37  ;;  %685 = vmatprep.mubr.bf16.mxu0 %v1493_v38 }
  0x30   : > { %749 = vmatprep.mubr.bf16.mxu1 %v1495_v39 }
  0x31   : > { %1325 = vmatpush3.bf16.msra.mxu0 %v1492_v37 }
  0x32   : > { %1355 = vmatpush3.bf16.msra.mxu1 %v1492_v37  ;;  %1326 = vmatprep.subr.bf16.mxu0 %v1499_v41 }
  0x33   : > { %1348 = vmatprep.subr.bf16.mxu1 %v1499_v41 }
  0x34   : > { %686 = vmatmul.mubr.bf16.gmra.mrb[4].mxu0 %v1497_v40 }
  0x35   : > { %750 = vmatmul.mubr.bf16.gmra.mrb[4].mxu1 %v1498_v42  ;;  %693 = vmatprep.mubr.bf16.mxu0 %v1501_v43 }
  0x36   : > { %1327 = vmatpush3.bf16.msra.mxu0 %v1499_v41  ;;  %757 = vmatprep.mubr.bf16.mxu1 %v1503_v45 }
  0x37   : > { %1356 = vmatpush3.bf16.msra.mxu1 %v1499_v41  ;;  %1328 = vmatprep.subr.bf16.mxu0 %v1500_v44 }
  0x38   : > { %1349 = vmatprep.subr.bf16.mxu1 %v1500_v44 }
  0x3a   : > { %1329 = vmatpush3.bf16.msra.mxu0 %v1500_v44 }
  0x3b   : > { %1357 = vmatpush3.bf16.msra.mxu1 %v1500_v44  ;;  %1330 = vmatprep.subr.bf16.mxu0 %v1507_v46 }
  0x3c   : > { %694 = vmatmul.mubr.bf16.gmra.mrb[8].mxu0 %v1505_v49  ;;  %1350 = vmatprep.subr.bf16.mxu1 %v1507_v46 }
  0x3d   : > { %758 = vmatmul.mubr.bf16.gmra.mrb[8].mxu1 %v1506_v50  ;;  %701 = vmatprep.mubr.bf16.mxu0 %v1142_v51 }
  0x3e   : > { %1331 = vmatpush3.bf16.msra.mxu0 %v1507_v46  ;;  %765 = vmatprep.mubr.bf16.mxu1 %v1144_v52 }
  0x3f   : > { %1358 = vmatpush3.bf16.msra.mxu1 %v1507_v46  ;;  %1332 = vmatprep.subr.bf16.mxu0 %v1508_v53 }
  0x40   : > { %1351 = vmatprep.subr.bf16.mxu1 %v1508_v53 }
  0x42   : > { %1333 = vmatpush3.bf16.msra.mxu0 %v1508_v53 }
  0x43   : > { %1359 = vmatpush3.bf16.msra.mxu1 %v1508_v53  ;;  %1334 = vmatprep.subr.bf16.mxu0 %v1513_v54 }
  0x44   : > { %702 = vmatmul.mubr.bf16.gmra.mrb[12].mxu0 %v1141_v55  ;;  %1352 = vmatprep.subr.bf16.mxu1 %v1513_v54 }
  0x45   : > { %766 = vmatmul.mubr.bf16.gmra.mrb[12].mxu1 %v1143_v56  ;;  %1338 = vmatprep.mubr.bf16.mxu0 %v1515_v57 }
  0x46   : > { %1335 = vmatpush3.bf16.msra.mxu0 %v1513_v54  ;;  %1342 = vmatprep.mubr.bf16.mxu1 %v1516_v58 }
  0x47   : > { %1360 = vmatpush3.bf16.msra.mxu1 %v1513_v54  ;;  %1336 = vmatprep.subr.bf16.mxu0 %v1514_v59 }
  0x48   : > { %1353 = vmatprep.subr.bf16.mxu1 %v1514_v59 }
  0x4a   : > { %1337 = vmatpush3.bf16.msra.mxu0 %v1514_v59 }
  0x4b   : > { %1361 = vmatpush3.bf16.msra.mxu1 %v1514_v59 }
  0x4d   : > { %1339 = vmatmul.mubr.bf16.vlgmr.msra.gmra.mrb[16].mxu0 %v1517_v60 }
  0x4e   : > { %1343 = vmatmul.mubr.bf16.vlgmr.msra.gmra.mrb[16].mxu1 %v1518_v61 }
  0xff   : > { %v1246_v62 = vpop.f32.mrb[0].mxu0 }
 0x100   : > { %v1286_v63 = vpop.f32.mrb[0].mxu1  ;;  %v1247_v1 = vpop.f32.mrb[1].mxu0 }
 0x101   : > { %v1248_v2 = vadd.f32 %v1247_v1, %v1246_v62  ;;  %v1287_v3 = vpop.f32.mrb[1].mxu1  ;;  %v1249_v4 = vpop.f32.mrb[2].mxu0 }
 0x102   : > { %v1288_v5 = vadd.f32 %v1287_v3, %v1286_v63  ;;  %v1289_v6 = vpop.f32.mrb[2].mxu1  ;;  %v1250_v7 = vpop.f32.mrb[3].mxu0 }
 0x103   : > { %v680_v8 = vadd.f32 %v1248_v2, %v1125_v0  ;;  %v1251_v9 = vadd.f32 %v1250_v7, %v1249_v4  ;;  %v1290_v10 = vpop.f32.mrb[3].mxu1 }
 0x104   : > { %v1291_v11 = vadd.f32 %v1290_v10, %v1289_v6 }
 0x105   : > { %v683_v12 = vadd.f32 %v1251_v9, %v1125_v0  ;;  %v744_v13 = vadd.f32 %v1288_v5, %v680_v8 }
 0x107   : > { %v1252_v14 = vpop.f32.mrb[4].mxu0  ;;  %v747_v15 = vadd.f32 %v1291_v11, %v683_v12 }
 0x108   : > { %v1292_v16 = vpop.f32.mrb[4].mxu1  ;;  %v1253_v17 = vpop.f32.mrb[5].mxu0 }
 0x109   : > { %v1254_v18 = vadd.f32 %v1253_v17, %v1252_v14  ;;  %v1293_v19 = vpop.f32.mrb[5].mxu1  ;;  %v1255_v20 = vpop.f32.mrb[6].mxu0 }
 0x10a   : > { %v1294_v21 = vadd.f32 %v1293_v19, %v1292_v16  ;;  %v1295_v22 = vpop.f32.mrb[6].mxu1  ;;  %v1256_v23 = vpop.f32.mrb[7].mxu0 }
 0x10b   : > { %v688_v24 = vadd.f32 %v1254_v18, %v1125_v0  ;;  %v1257_v25 = vadd.f32 %v1256_v23, %v1255_v20  ;;  %v1296_v26 = vpop.f32.mrb[7].mxu1 }
 0x10c   : > { %v1297_v27 = vadd.f32 %v1296_v26, %v1295_v22 }
 0x10d   : > { %v691_v28 = vadd.f32 %v1257_v25, %v1125_v0  ;;  %v752_v29 = vadd.f32 %v1294_v21, %v688_v24 }
 0x10f   : > { %v1258_v30 = vpop.f32.mrb[8].mxu0  ;;  %v755_v31 = vadd.f32 %v1297_v27, %v691_v28 }
 0x110   : > { %v1298_v32 = vpop.f32.mrb[8].mxu1  ;;  %v1259_v33 = vpop.f32.mrb[9].mxu0 }
 0x111   : > { %v1260_v34 = vadd.f32 %v1259_v33, %v1258_v30  ;;  %v1299_v35 = vpop.f32.mrb[9].mxu1  ;;  %v1261_v36 = vpop.f32.mrb[10].mxu0 }
 0x112   : > { %v1300_v37 = vadd.f32 %v1299_v35, %v1298_v32  ;;  %v1301_v38 = vpop.f32.mrb[10].mxu1  ;;  %v1262_v39 = vpop.f32.mrb[11].mxu0 }
 0x113   : > { %v696_v40 = vadd.f32 %v1260_v34, %v1125_v0  ;;  %v1263_v41 = vadd.f32 %v1262_v39, %v1261_v36  ;;  %v1302_v42 = vpop.f32.mrb[11].mxu1 }
 0x114   : > { %v1303_v43 = vadd.f32 %v1302_v42, %v1301_v38 }
 0x115   : > { %v699_v44 = vadd.f32 %v1263_v41, %v1125_v0  ;;  %v760_v45 = vadd.f32 %v1300_v37, %v696_v40 }
 0x117   : > { %v1264_v46 = vpop.f32.mrb[12].mxu0  ;;  %v763_v47 = vadd.f32 %v1303_v43, %v699_v44 }
 0x118   : > { %v1304_v48 = vpop.f32.mrb[12].mxu1  ;;  %v1265_v49 = vpop.f32.mrb[13].mxu0 }
 0x119   : > { %v1266_v50 = vadd.f32 %v1265_v49, %v1264_v46  ;;  %v1305_v51 = vpop.f32.mrb[13].mxu1  ;;  %v1267_v52 = vpop.f32.mrb[14].mxu0 }
 0x11a   : > { %v1306_v53 = vadd.f32 %v1305_v51, %v1304_v48  ;;  %v1307_v54 = vpop.f32.mrb[14].mxu1  ;;  %v1268_v55 = vpop.f32.mrb[15].mxu0 }
 0x11b   : > { %v704_v56 = vadd.f32 %v1266_v50, %v1125_v0  ;;  %v1308_v57 = vpop.f32.mrb[15].mxu1 }
 0x11d   : > { %v768_v58 = vadd.f32 %v1306_v53, %v704_v56 }
 0x120   : > { %v1340_v59 = vpop.f32.mrb[16].mxu0 }
 0x121   : > { %v816_v60 = vadd.f32 %v1340_v59, %v752_v29  ;;  %v1344_v61 = vpop.f32.mrb[16].mxu1  ;;  %v807_v62 = vpop.f32.mrb[17].mxu0 }
 0x122   : > { %v832_v63 = vadd.f32 %v1344_v61, %v768_v58  ;;  %v808_v1 = vadd.f32 %v807_v62, %v744_v13  ;;  %v823_v2 = vpop.f32.mrb[17].mxu1  ;;  %v1341_v3 = vpop.f32.mrb[18].mxu0 }
 0x123   : > { %v824_v4 = vadd.f32 %v823_v2, %v760_v45  ;;  %v819_v5 = vadd.f32 %v1341_v3, %v755_v31  ;;  %v1345_v6 = vpop.f32.mrb[18].mxu1  ;;  %v810_v7 = vpop.f32.mrb[19].mxu0  ;;  %v839_v0 = vmax.f32 %v816_v60, 0.0 }
 0x124   : > { %v843_v8 = vmax.f32 %v832_v63, 0.0  ;;  %v811_v9 = vadd.f32 %v810_v7, %v747_v15  ;;  %v826_v10 = vpop.f32.mrb[19].mxu1  ;;  %v837_v16 = vmax.f32 %v808_v1, 0.0 }
 0x125   : > { %v840_v11 = vmax.f32 %v819_v5, 0.0  ;;  %v827_v12 = vadd.f32 %v826_v10, %v763_v47  ;;  %v841_v18 = vmax.f32 %v824_v4, 0.0  ;;  %886 = sbr.rel (!%p1656_p4) target bundleno = 366 (0x16e), region = 36 }
 0x126   : > { %v1211_v14 = vpack.c.bf16 %v843_v8, %v843_v8  ;;  %v838_v17 = vmax.f32 %v811_v9, 0.0 }
 0x127   : > { %v1221_v19 = vpack.c.bf16 %v840_v11, %v839_v0  ;;  %v842_v20 = vmax.f32 %v827_v12, 0.0 }
 0x128   : > { %879 = vst [vmem:[%s1812_s12 + $0x18] sm:$0xf] %v1211_v14  ;;  %v1216_v13 = vpack.c.bf16 %v838_v17, %v837_v16 }
 0x129   : > { %1228 = vst [vmem:[%s1812_s12 + $0x8] sm:$0xff] %v1221_v19   ;;  %v1226_v15 = vpack.c.bf16 %v842_v20, %v841_v18 }
 0x12a   : > { %1217 = vst [vmem:[%s1812_s12] sm:$0xff] %v1216_v13  }
 0x12b   : > { %1229 = vst [vmem:[%s1812_s12 + $0x10] sm:$0xff] %v1226_v15  }
 0x12c   : > { %s1886_s30 = smov (!%p889_p8, %s888_s30), 7 }
 0x12d   : > { %s1193_s8 = sshll.u32 %s1886_s30, 6 }
 0x12e   : > { %p1196_p9 = scmp.eq.s32.totalorder %s1193_s8, 0 }
 0x12f   : > { %1519 = sdivrem.u32 (!%p1196_p9), %s1886_s30, 7 }
 0x130   : > { %897 = sbr.rel (%p1196_p9) target bundleno = 366 (0x16e), region = 40 }
 0x138   : > { %s1831_s20 = spop.drf %1519 }
 0x139   : > { %p1197_p10 = scmp.le.s32.totalorder %s1831_s20, 0 }
 0x13a   : > { %s1879_s15 = smov (!%p1197_p10), %s1825_s7  ;;  %s1880_s28 = smov (!%p1197_p10), %s1812_s12 }
 0x13b   : > { %1076 = sbr.rel (%p1197_p10) target bundleno = 337 (0x151), region = 112  ;;  %s1840_s9 = smov (!%p1197_p10), 0  }
 0x13c   : > { %s1842_s10 = smov (!%p1197_p10), 0  }
 0x142 LB: >> { %v914_v21 = vld [vmem:[%s1585_s28] sm:$0xf]  ;;  %v916_v22 = vld [vmem:[%s1585_s28 + $0x4] sm:$0xf]  ;;  %v918_v23 = vld [vmem:[%s1585_s28 + $0x8] sm:$0xf]  ;;  %s1593_s10 = sphi %s1842_s10, %s908_s10   ;;  %s1589_s9 = sphi %s1840_s9, %s1881_s9   ;;  %s1585_s28 = sphi %s1880_s28, %s933_s28   ;;  %s1581_s15 = sphi %s1879_s15, %s934_s15  }
 0x143   : >> { %915 = vst [vmem:[%s1581_s15] sm:$0xf] %v914_v21  ;;  %917 = vst [vmem:[%s1581_s15 + $0x4] sm:$0xf] %v916_v22  ;;  %v920_v24 = vld [vmem:[%s1585_s28 + $0xc] sm:$0xf]  ;;  %s928_s11 = sadd.s32 1, %s1589_s9 }
 0x144   : >> { %919 = vst [vmem:[%s1581_s15 + $0x8] sm:$0xf] %v918_v23  ;;  %v922_v25 = vld [vmem:[%s1585_s28 + $0x10] sm:$0xf]  ;;  %v924_v26 = vld [vmem:[%s1585_s28 + $0x14] sm:$0xf]  ;;  %p929_p11 = scmp.ge.s32.totalorder %s928_s11, %s1831_s20 }
 0x145   : >> { %921 = vst [vmem:[%s1581_s15 + $0xc] sm:$0xf] %v920_v24  ;;  %923 = vst [vmem:[%s1581_s15 + $0x10] sm:$0xf] %v922_v25  ;;  %v926_v27 = vld [vmem:[%s1585_s28 + $0x18] sm:$0xf] }
 0x146   : >> { %925 = vst [vmem:[%s1581_s15 + $0x14] sm:$0xf] %v924_v26  ;;  %927 = vst [vmem:[%s1581_s15 + $0x18] sm:$0xf] %v926_v27  ;;  %s1888_s11 = smov (%p929_p11, %s928_s11), 0  ;;  %s908_s10 = sadd.s32 1, %s1593_s10  }
 0x147   : >> { %s931_s14 = smul.u32 28, %s1888_s11  ;;  %p907_p12 = scmp.ge.s32.totalorder %s908_s10, %s1831_s20 }
 0x148   : >> { %s1881_s9 = smov %s1888_s11 }
 0x149   : >> { %s933_s28 = scalar_lea.vmem %s1812_s12, %s931_s14 [#allocation2]   ;;  %s934_s15 = scalar_lea.vmem %s1825_s7, %s931_s14  }
 0x14a   : > { %910 = sbr.rel (!%p907_p12) target bundleno = 322 (0x142), region = 118 }
 0x151 PF: > { %1521 = sdivrem.u32 %s1886_s30, 7 }
 0x152   : > { %s1198_s17 = smul.u32 28, %s1831_s20 }
 0x154   : > { %s939_s18 = scalar_lea.vmem %s1812_s12, %s1198_s17 [#allocation2]   ;;  %s941_s21 = scalar_lea.vmem %s1825_s7, %s1198_s17  }
 0x15a   : > { %s1522_s22 = spop.drf %1521 }
 0x15b   : > { %p1200_p13 = scmp.le.s32.totalorder %s1522_s22, 0 }
 0x15c   : > { %s1595_s23 = smov (!%p1200_p13), %s941_s21   ;;  %s1599_s25 = smov (!%p1200_p13), %s939_s18  }
 0x15d   : > { %1090 = sbr.rel (%p1200_p13) target bundleno = 366 (0x16e), region = 123  ;;  %s1603_s26 = smov (!%p1200_p13), 0  }
 0x15e   : > { %s1607_s27 = smov (!%p1200_p13), 0  }
 0x164 LB: >> { %v951_v28 = vld [vmem:[%s1601_s25] sm:$0xf]  ;;  %s953_s24 = sadd.s32 1, %s1605_s26  ;;  %s945_s27 = sadd.s32 1, %s1609_s27   ;;  %s1609_s27 = sphi %s1607_s27, %s945_s27   ;;  %s1605_s26 = sphi %s1603_s26, %s1604_s26   ;;  %s1601_s25 = sphi %s1599_s25, %s958_s25   ;;  %s1597_s23 = sphi %s1595_s23, %s959_s23  }
 0x165   : >> { %952 = vst [vmem:[%s1597_s23] sm:$0xf] %v951_v28  ;;  %p954_p0 = scmp.ge.s32.totalorder %s953_s24, %s1522_s22  ;;  %p944_p1 = scmp.ge.s32.totalorder %s945_s27, %s1522_s22 }
 0x167   : >> { %s1890_s24 = smov (%p954_p0, %s953_s24), 0  ;;  %947 = sbr.rel (!%p944_p1) target bundleno = 356 (0x164), region = 129 }
 0x168   : >> { %s1201_s29 = sshll.u32 %s1890_s24, 2  ;;  %s1604_s26 = smov %s1890_s24  }
 0x169   : >> { %s958_s25 = scalar_lea.vmem %s939_s18, %s1201_s29 [#allocation2]   ;;  %s959_s23 = scalar_lea.vmem %s941_s21, %s1201_s29  }
 0x16e PF: > { %p10_p2 = scmp.ge.s32.totalorder %s1646_s16, 4   ;;  %s1882_s12 = smov %s1573_s13 }
 0x16f   : > { %s1883_s13 = smov %s1654_s19  ;;  %s1884_s14 = smov %s1646_s16 }
 0x170   :  { %12 = sbr.rel (!%p10_p2) target bundleno = 2 (0x2), region = 140 }

</bundles_post_ra>
